<compile_context>
chip_gen: v7x
topology: tpu7x:2x2x1
jax: 0.10.0
libtpu: 0.0.40
codegen_flags: <defaults>
</compile_context>

<pallas_src>
import functools

import jax
import jax.numpy as jnp
from jax import lax
from jax.experimental import pallas as pl
from jax.experimental.pallas import tpu as pltpu


# ---------------------------------------------------------------------------
# Fused forward kernel
# ---------------------------------------------------------------------------
def _critic_fused_kernel(n_pos, batch,
                         p1_ref, a_ref,
                         w1m_ref, b1_ref,
                         w2m_ref, b2_ref,
                         wfc_int_ref, w1a_ref, beff_ref,
                         w2row_ref, b2fc_ref,
                         o_ref):
    """Whole Critic forward.  Everything stays resident in VMEM/vregs.

    p1_ref : (4*n_pos*batch, Cin*4)  conv1 im2col patches, rows = (py,px,i,j,b)
    a_ref  : (batch, num_action)
    Output : (batch, 1)
    """
    c1 = w1m_ref.shape[1]          # conv1 out channels (= conv2 in channels) = 16
    pb = n_pos * batch             # rows per parity block

    # ---- conv1 (full 10x10 output, parity-major row order) + ReLU ----------
    out1 = jnp.maximum(
        jnp.dot(p1_ref[...], w1m_ref[...], preferred_element_type=jnp.float32)
        + b1_ref[...], 0.0)                                   # (4*pb, 16)

    # ---- conv2 interior (5x5) + ReLU ---------------------------------------
    # Patch block (dy, dx) of conv2 == parity block (dy, dx) of conv1's output.
    acc = jnp.dot(out1[0:pb, :], w2m_ref[0:c1, :],
                  preferred_element_type=jnp.float32)
    for blk in range(1, 4):
        acc = acc + jnp.dot(out1[blk * pb:(blk + 1) * pb, :],
                            w2m_ref[blk * c1:(blk + 1) * c1, :],
                            preferred_element_type=jnp.float32)
    out2 = jnp.maximum(acc + b2_ref[...], 0.0)                # (pb, 16) rows=(i2,j2,b)

    # ---- value head: fc1 (conv part + action part + folded border bias) ----
    h = jnp.dot(a_ref[...], w1a_ref[...],
                preferred_element_type=jnp.float32) + beff_ref[...]
    for m in range(n_pos):                                    # interior positions
        h = h + jnp.dot(out2[m * batch:(m + 1) * batch, :], wfc_int_ref[m],
                        preferred_element_type=jnp.float32)
    h = jnp.maximum(h, 0.0)                                   # (batch, 16)

    # ---- fc2 (16 -> 1): VPU multiply + lane reduce, no 1-column MXU matmul --
    o_ref[...] = jnp.sum(h * w2row_ref[...], axis=1, keepdims=True) + b2fc_ref[...]


@jax.jit
def critic_forward(params, x, a):
    B, C, H, W = x.shape
    assert H % 4 == 0 and W % 4 == 0, "parity-major im2col needs H, W % 4 == 0"
    oh1, ow1 = H // 2 + 2, W // 2 + 2          # conv1 output size (10, 10)
    ih, iw = oh1 // 2, ow1 // 2                # parity grid = conv2 interior (5, 5)
    n_pos = ih * iw

    # -- the only per-call glue: conv1 im2col, parity-major row order ---------
    xp = jnp.pad(x, ((0, 0), (0, 0), (2, 2), (2, 2)))
    p1 = xp.reshape(B, C, ih, 2, 2, iw, 2, 2)       # [b, c, i, py, dy, j, px, dx]
    p1 = p1.transpose(3, 6, 2, 5, 0, 1, 4, 7)       # [py, px, i, j, b, c, dy, dx]
    p1 = p1.reshape(4 * n_pos * B, C * 4)           # (200, 16) for B=2, C=4

    kernel = functools.partial(_critic_fused_kernel, n_pos, B)
    vmem = pl.BlockSpec(memory_space=pltpu.MemorySpace.VMEM)
    v = pl.pallas_call(
        kernel,
        out_shape=jax.ShapeDtypeStruct((B, 1), jnp.float32),
        in_specs=[vmem] * 11,
        out_specs=vmem,
    )(p1, a,
      params["w1m"], params["b1"],
      params["w2m"], params["b2"],
      params["wfc_int"], params["w1a"], params["b_eff"],
      params["w2row"], params["b2fc"])
    return v[:, 0]                                   # squeeze(1)


# ---------------------------------------------------------------------------
# Parameter init (PyTorch layout) and one-time prep into kernel-ready layout
# ---------------------------------------------------------------------------
def _conv_out(s):  # actual conv output size for kernel=2, stride=2, pad=2
    return (s + 2 * 2 - 2) // 2 + 1


def _uniform(key, shape, bound):
    return jax.random.uniform(key, shape, jnp.float32, -bound, bound)


def init_raw_params(key, in_channel, h, w, num_action):
    convw = _conv_out(_conv_out(w))
    convh = _conv_out(_conv_out(h))
    linear_input_size = convw * convh * 16 + num_action
    ks = jax.random.split(key, 8)
    fan1 = in_channel * 4
    fan2 = 16 * 4
    return {
        "conv1_w": _uniform(ks[0], (16, in_channel, 2, 2), 1.0 / jnp.sqrt(fan1)),
        "conv1_b": _uniform(ks[1], (16,), 1.0 / jnp.sqrt(fan1)),
        "conv2_w": _uniform(ks[2], (16, 16, 2, 2), 1.0 / jnp.sqrt(fan2)),
        "conv2_b": _uniform(ks[3], (16,), 1.0 / jnp.sqrt(fan2)),
        "fc1_w": _uniform(ks[4], (16, linear_input_size), 1.0 / jnp.sqrt(linear_input_size)),
        "fc1_b": _uniform(ks[5], (16,), 1.0 / jnp.sqrt(linear_input_size)),
        "fc2_w": _uniform(ks[6], (1, 16), 1.0 / jnp.sqrt(16.0)),
        "fc2_b": _uniform(ks[7], (1,), 1.0 / jnp.sqrt(16.0)),
    }


def prepare_params(raw, in_channel, h, w, num_action):
    """One-time, init-side layout prep (hoisted out of the forward path)."""
    oh1, ow1 = h // 2 + 2, w // 2 + 2           # conv1 output (10, 10)
    oh2, ow2 = oh1 // 2 + 2, ow1 // 2 + 2       # conv2 full output (7, 7)
    f_conv = 16 * oh2 * ow2                     # 784
    c = in_channel

    # conv1 weights -> (Cin*4, 16), rows ordered (c, dy, dx)
    w1m = raw["conv1_w"].reshape(16, c * 4).T
    # conv2 weights -> (4*16, 16), rows ordered (dy, dx, c)
    w2m = raw["conv2_w"].transpose(2, 3, 1, 0).reshape(4 * 16, 16)

    # fc1 weights split: conv-interior part, action part, and border folded bias
    w4 = raw["fc1_w"][:, :f_conv].reshape(16, 16, oh2, ow2)          # [u, c, y2, x2]
    wfc_int = (w4[:, :, 1:oh2 - 1, 1:ow2 - 1]
               .transpose(2, 3, 1, 0)
               .reshape((oh2 - 2) * (ow2 - 2), 16, 16))              # [m=(i2,j2), c, u]
    border = jnp.ones((oh2, ow2), jnp.float32).at[1:-1, 1:-1].set(0.0)
    rb2 = jnp.maximum(raw["conv2_b"], 0.0)      # conv2 border outputs == relu(b2)
    b_eff = raw["fc1_b"] + jnp.einsum("ucyx,yx,c->u", w4, border, rb2)

    return {
        "w1m": w1m,
        "b1": raw["conv1_b"].reshape(1, 16),
        "w2m": w2m,
        "b2": raw["conv2_b"].reshape(1, 16),
        "wfc_int": wfc_int,
        "w1a": raw["fc1_w"][:, f_conv:].T,       # (num_action, 16)
        "b_eff": b_eff.reshape(1, 16),
        "w2row": raw["fc2_w"].reshape(1, 16),
        "b2fc": raw["fc2_b"].reshape(1, 1),
    }


# ---------------------------------------------------------------------------
# Pure-JAX reference (mirrors the PyTorch forward)
# ---------------------------------------------------------------------------
def reference_forward(raw, x, a):
    def conv(x, w, b):
        y = lax.conv_general_dilated(
            x, w, window_strides=(2, 2), padding=((2, 2), (2, 2)),
            dimension_numbers=("NCHW", "OIHW", "NCHW"))
        return jnp.maximum(y + b.reshape(1, -1, 1, 1), 0.0)

    x = conv(x, raw["conv1_w"], raw["conv1_b"])
    x = conv(x, raw["conv2_w"], raw["conv2_b"])
    flat = x.reshape(x.shape[0], -1)
    xa = jnp.concatenate([flat, a], axis=1)
    h = jnp.maximum(xa @ raw["fc1_w"].T + raw["fc1_b"], 0.0)
    v = h @ raw["fc2_w"].T + raw["fc2_b"]
    return v[:, 0]


if __name__ == "__main__":
    B, C, H, W, NUM_ACTION = 2, 4, 16, 16, 4

    key = jax.random.PRNGKey(0)
    kx, ka, kp = jax.random.split(key, 3)
    x = jax.random.normal(kx, (B, C, H, W), jnp.float32)
    a = jax.random.normal(ka, (B, NUM_ACTION), jnp.float32)

    raw = init_raw_params(kp, C, H, W, NUM_ACTION)
    params = prepare_params(raw, C, H, W, NUM_ACTION)

    out = jax.block_until_ready(critic_forward(params, x, a))
    ref = jax.block_until_ready(reference_forward(raw, x, a))

    assert out.shape == (B,), out.shape
    assert jnp.allclose(out, ref, atol=1e-3, rtol=1e-3), (out, ref)
    print("KERNEL_OK")
</pallas_src>

<mosaic_0001>
module attributes {stable_mosaic.version = 11 : i64} {
  func.func @_critic_fused_kernel(%arg0: memref<200x16xf32, #tpu.memory_space<vmem>>, %arg1: memref<2x4xf32, #tpu.memory_space<vmem>>, %arg2: memref<16x16xf32, #tpu.memory_space<vmem>>, %arg3: memref<1x16xf32, #tpu.memory_space<vmem>>, %arg4: memref<64x16xf32, #tpu.memory_space<vmem>>, %arg5: memref<1x16xf32, #tpu.memory_space<vmem>>, %arg6: memref<25x16x16xf32, #tpu.memory_space<vmem>>, %arg7: memref<4x16xf32, #tpu.memory_space<vmem>>, %arg8: memref<1x16xf32, #tpu.memory_space<vmem>>, %arg9: memref<1x16xf32, #tpu.memory_space<vmem>>, %arg10: memref<1x1xf32, #tpu.memory_space<vmem>>, %arg11: memref<2x1xf32, #tpu.memory_space<vmem>>) attributes {dimension_semantics = [], scalar_prefetch = 0 : i64, scratch_operands = 0 : i64, tpu.core_type = #tpu.core_type<tc>} {
    %c0 = arith.constant 0 : index
    %c0_0 = arith.constant 0 : index
    %0 = vector.load %arg0[%c0, %c0_0] : memref<200x16xf32, #tpu.memory_space<vmem>>, vector<200x16xf32>
    %c0_1 = arith.constant 0 : index
    %c0_2 = arith.constant 0 : index
    %1 = vector.load %arg2[%c0_1, %c0_2] : memref<16x16xf32, #tpu.memory_space<vmem>>, vector<16x16xf32>
    %cst = arith.constant dense<0.000000e+00> : vector<200x16xf32>
    %2 = tpu.matmul %0, %1, %cst {dimension_numbers = #tpu.dot_dimension_numbers<[1], [0], [0], [1], [0, 0, 1, 1], [], []>} : vector<200x16xf32>, vector<16x16xf32>, vector<200x16xf32> -> vector<200x16xf32>
    %c0_3 = arith.constant 0 : index
    %c0_4 = arith.constant 0 : index
    %3 = vector.load %arg3[%c0_3, %c0_4] : memref<1x16xf32, #tpu.memory_space<vmem>>, vector<1x16xf32>
    %4 = vector.broadcast %3 : vector<1x16xf32> to vector<200x16xf32>
    %5 = arith.addf %2, %4 : vector<200x16xf32>
    %cst_5 = arith.constant 0.000000e+00 : f32
    %6 = vector.broadcast %cst_5 : f32 to vector<200x16xf32>
    %7 = arith.maximumf %5, %6 : vector<200x16xf32>
    %8 = vector.extract_strided_slice %7 {offsets = [0, 0], sizes = [50, 16], strides = [1, 1]} : vector<200x16xf32> to vector<50x16xf32>
    %c0_6 = arith.constant 0 : index
    %c0_7 = arith.constant 0 : index
    %9 = vector.load %arg4[%c0_6, %c0_7] : memref<64x16xf32, #tpu.memory_space<vmem>>, vector<16x16xf32>
    %cst_8 = arith.constant dense<0.000000e+00> : vector<50x16xf32>
    %10 = tpu.matmul %8, %9, %cst_8 {dimension_numbers = #tpu.dot_dimension_numbers<[1], [0], [0], [1], [0, 0, 1, 1], [], []>} : vector<50x16xf32>, vector<16x16xf32>, vector<50x16xf32> -> vector<50x16xf32>
    %11 = vector.extract_strided_slice %7 {offsets = [50, 0], sizes = [50, 16], strides = [1, 1]} : vector<200x16xf32> to vector<50x16xf32>
    %c16 = arith.constant 16 : index
    %c0_9 = arith.constant 0 : index
    %12 = vector.load %arg4[%c16, %c0_9] : memref<64x16xf32, #tpu.memory_space<vmem>>, vector<16x16xf32>
    %cst_10 = arith.constant dense<0.000000e+00> : vector<50x16xf32>
    %13 = tpu.matmul %11, %12, %cst_10 {dimension_numbers = #tpu.dot_dimension_numbers<[1], [0], [0], [1], [0, 0, 1, 1], [], []>} : vector<50x16xf32>, vector<16x16xf32>, vector<50x16xf32> -> vector<50x16xf32>
    %14 = arith.addf %10, %13 : vector<50x16xf32>
    %15 = vector.extract_strided_slice %7 {offsets = [100, 0], sizes = [50, 16], strides = [1, 1]} : vector<200x16xf32> to vector<50x16xf32>
    %c32 = arith.constant 32 : index
    %c0_11 = arith.constant 0 : index
    %16 = vector.load %arg4[%c32, %c0_11] : memref<64x16xf32, #tpu.memory_space<vmem>>, vector<16x16xf32>
    %cst_12 = arith.constant dense<0.000000e+00> : vector<50x16xf32>
    %17 = tpu.matmul %15, %16, %cst_12 {dimension_numbers = #tpu.dot_dimension_numbers<[1], [0], [0], [1], [0, 0, 1, 1], [], []>} : vector<50x16xf32>, vector<16x16xf32>, vector<50x16xf32> -> vector<50x16xf32>
    %18 = arith.addf %14, %17 : vector<50x16xf32>
    %19 = vector.extract_strided_slice %7 {offsets = [150, 0], sizes = [50, 16], strides = [1, 1]} : vector<200x16xf32> to vector<50x16xf32>
    %c48 = arith.constant 48 : index
    %c0_13 = arith.constant 0 : index
    %20 = vector.load %arg4[%c48, %c0_13] : memref<64x16xf32, #tpu.memory_space<vmem>>, vector<16x16xf32>
    %cst_14 = arith.constant dense<0.000000e+00> : vector<50x16xf32>
    %21 = tpu.matmul %19, %20, %cst_14 {dimension_numbers = #tpu.dot_dimension_numbers<[1], [0], [0], [1], [0, 0, 1, 1], [], []>} : vector<50x16xf32>, vector<16x16xf32>, vector<50x16xf32> -> vector<50x16xf32>
    %22 = arith.addf %18, %21 : vector<50x16xf32>
    %c0_15 = arith.constant 0 : index
    %c0_16 = arith.constant 0 : index
    %23 = vector.load %arg5[%c0_15, %c0_16] : memref<1x16xf32, #tpu.memory_space<vmem>>, vector<1x16xf32>
    %24 = vector.broadcast %23 : vector<1x16xf32> to vector<50x16xf32>
    %25 = arith.addf %22, %24 : vector<50x16xf32>
    %cst_17 = arith.constant 0.000000e+00 : f32
    %26 = vector.broadcast %cst_17 : f32 to vector<50x16xf32>
    %27 = arith.maximumf %25, %26 : vector<50x16xf32>
    %c0_18 = arith.constant 0 : index
    %c0_19 = arith.constant 0 : index
    %28 = vector.load %arg1[%c0_18, %c0_19] : memref<2x4xf32, #tpu.memory_space<vmem>>, vector<2x4xf32>
    %c0_20 = arith.constant 0 : index
    %c0_21 = arith.constant 0 : index
    %29 = vector.load %arg7[%c0_20, %c0_21] : memref<4x16xf32, #tpu.memory_space<vmem>>, vector<4x16xf32>
    %cst_22 = arith.constant dense<0.000000e+00> : vector<2x16xf32>
    %30 = tpu.matmul %28, %29, %cst_22 {dimension_numbers = #tpu.dot_dimension_numbers<[1], [0], [0], [1], [0, 0, 1, 1], [], []>} : vector<2x4xf32>, vector<4x16xf32>, vector<2x16xf32> -> vector<2x16xf32>
    %c0_23 = arith.constant 0 : index
    %c0_24 = arith.constant 0 : index
    %31 = vector.load %arg8[%c0_23, %c0_24] : memref<1x16xf32, #tpu.memory_space<vmem>>, vector<1x16xf32>
    %32 = vector.broadcast %31 : vector<1x16xf32> to vector<2x16xf32>
    %33 = arith.addf %30, %32 : vector<2x16xf32>
    %34 = vector.extract_strided_slice %27 {offsets = [0, 0], sizes = [2, 16], strides = [1, 1]} : vector<50x16xf32> to vector<2x16xf32>
    %c0_25 = arith.constant 0 : index
    %c0_26 = arith.constant 0 : index
    %c0_27 = arith.constant 0 : index
    %35 = vector.load %arg6[%c0_25, %c0_26, %c0_27] : memref<25x16x16xf32, #tpu.memory_space<vmem>>, vector<1x16x16xf32>
    %36 = vector.shape_cast %35 : vector<1x16x16xf32> to vector<16x16xf32>
    %cst_28 = arith.constant dense<0.000000e+00> : vector<2x16xf32>
    %37 = tpu.matmul %34, %36, %cst_28 {dimension_numbers = #tpu.dot_dimension_numbers<[1], [0], [0], [1], [0, 0, 1, 1], [], []>} : vector<2x16xf32>, vector<16x16xf32>, vector<2x16xf32> -> vector<2x16xf32>
    %38 = arith.addf %33, %37 : vector<2x16xf32>
    %39 = vector.extract_strided_slice %27 {offsets = [2, 0], sizes = [2, 16], strides = [1, 1]} : vector<50x16xf32> to vector<2x16xf32>
    %c1 = arith.constant 1 : index
    %c0_29 = arith.constant 0 : index
    %c0_30 = arith.constant 0 : index
    %40 = vector.load %arg6[%c1, %c0_29, %c0_30] : memref<25x16x16xf32, #tpu.memory_space<vmem>>, vector<1x16x16xf32>
    %41 = vector.shape_cast %40 : vector<1x16x16xf32> to vector<16x16xf32>
    %cst_31 = arith.constant dense<0.000000e+00> : vector<2x16xf32>
    %42 = tpu.matmul %39, %41, %cst_31 {dimension_numbers = #tpu.dot_dimension_numbers<[1], [0], [0], [1], [0, 0, 1, 1], [], []>} : vector<2x16xf32>, vector<16x16xf32>, vector<2x16xf32> -> vector<2x16xf32>
    %43 = arith.addf %38, %42 : vector<2x16xf32>
    %44 = vector.extract_strided_slice %27 {offsets = [4, 0], sizes = [2, 16], strides = [1, 1]} : vector<50x16xf32> to vector<2x16xf32>
    %c2 = arith.constant 2 : index
    %c0_32 = arith.constant 0 : index
    %c0_33 = arith.constant 0 : index
    %45 = vector.load %arg6[%c2, %c0_32, %c0_33] : memref<25x16x16xf32, #tpu.memory_space<vmem>>, vector<1x16x16xf32>
    %46 = vector.shape_cast %45 : vector<1x16x16xf32> to vector<16x16xf32>
    %cst_34 = arith.constant dense<0.000000e+00> : vector<2x16xf32>
    %47 = tpu.matmul %44, %46, %cst_34 {dimension_numbers = #tpu.dot_dimension_numbers<[1], [0], [0], [1], [0, 0, 1, 1], [], []>} : vector<2x16xf32>, vector<16x16xf32>, vector<2x16xf32> -> vector<2x16xf32>
    %48 = arith.addf %43, %47 : vector<2x16xf32>
    %49 = vector.extract_strided_slice %27 {offsets = [6, 0], sizes = [2, 16], strides = [1, 1]} : vector<50x16xf32> to vector<2x16xf32>
    %c3 = arith.constant 3 : index
    %c0_35 = arith.constant 0 : index
    %c0_36 = arith.constant 0 : index
    %50 = vector.load %arg6[%c3, %c0_35, %c0_36] : memref<25x16x16xf32, #tpu.memory_space<vmem>>, vector<1x16x16xf32>
    %51 = vector.shape_cast %50 : vector<1x16x16xf32> to vector<16x16xf32>
    %cst_37 = arith.constant dense<0.000000e+00> : vector<2x16xf32>
    %52 = tpu.matmul %49, %51, %cst_37 {dimension_numbers = #tpu.dot_dimension_numbers<[1], [0], [0], [1], [0, 0, 1, 1], [], []>} : vector<2x16xf32>, vector<16x16xf32>, vector<2x16xf32> -> vector<2x16xf32>
    %53 = arith.addf %48, %52 : vector<2x16xf32>
    %54 = vector.extract_strided_slice %27 {offsets = [8, 0], sizes = [2, 16], strides = [1, 1]} : vector<50x16xf32> to vector<2x16xf32>
    %c4 = arith.constant 4 : index
    %c0_38 = arith.constant 0 : index
    %c0_39 = arith.constant 0 : index
    %55 = vector.load %arg6[%c4, %c0_38, %c0_39] : memref<25x16x16xf32, #tpu.memory_space<vmem>>, vector<1x16x16xf32>
    %56 = vector.shape_cast %55 : vector<1x16x16xf32> to vector<16x16xf32>
    %cst_40 = arith.constant dense<0.000000e+00> : vector<2x16xf32>
    %57 = tpu.matmul %54, %56, %cst_40 {dimension_numbers = #tpu.dot_dimension_numbers<[1], [0], [0], [1], [0, 0, 1, 1], [], []>} : vector<2x16xf32>, vector<16x16xf32>, vector<2x16xf32> -> vector<2x16xf32>
    %58 = arith.addf %53, %57 : vector<2x16xf32>
    %59 = vector.extract_strided_slice %27 {offsets = [10, 0], sizes = [2, 16], strides = [1, 1]} : vector<50x16xf32> to vector<2x16xf32>
    %c5 = arith.constant 5 : index
    %c0_41 = arith.constant 0 : index
    %c0_42 = arith.constant 0 : index
    %60 = vector.load %arg6[%c5, %c0_41, %c0_42] : memref<25x16x16xf32, #tpu.memory_space<vmem>>, vector<1x16x16xf32>
    %61 = vector.shape_cast %60 : vector<1x16x16xf32> to vector<16x16xf32>
    %cst_43 = arith.constant dense<0.000000e+00> : vector<2x16xf32>
    %62 = tpu.matmul %59, %61, %cst_43 {dimension_numbers = #tpu.dot_dimension_numbers<[1], [0], [0], [1], [0, 0, 1, 1], [], []>} : vector<2x16xf32>, vector<16x16xf32>, vector<2x16xf32> -> vector<2x16xf32>
    %63 = arith.addf %58, %62 : vector<2x16xf32>
    %64 = vector.extract_strided_slice %27 {offsets = [12, 0], sizes = [2, 16], strides = [1, 1]} : vector<50x16xf32> to vector<2x16xf32>
    %c6 = arith.constant 6 : index
    %c0_44 = arith.constant 0 : index
    %c0_45 = arith.constant 0 : index
    %65 = vector.load %arg6[%c6, %c0_44, %c0_45] : memref<25x16x16xf32, #tpu.memory_space<vmem>>, vector<1x16x16xf32>
    %66 = vector.shape_cast %65 : vector<1x16x16xf32> to vector<16x16xf32>
    %cst_46 = arith.constant dense<0.000000e+00> : vector<2x16xf32>
    %67 = tpu.matmul %64, %66, %cst_46 {dimension_numbers = #tpu.dot_dimension_numbers<[1], [0], [0], [1], [0, 0, 1, 1], [], []>} : vector<2x16xf32>, vector<16x16xf32>, vector<2x16xf32> -> vector<2x16xf32>
    %68 = arith.addf %63, %67 : vector<2x16xf32>
    %69 = vector.extract_strided_slice %27 {offsets = [14, 0], sizes = [2, 16], strides = [1, 1]} : vector<50x16xf32> to vector<2x16xf32>
    %c7 = arith.constant 7 : index
    %c0_47 = arith.constant 0 : index
    %c0_48 = arith.constant 0 : index
    %70 = vector.load %arg6[%c7, %c0_47, %c0_48] : memref<25x16x16xf32, #tpu.memory_space<vmem>>, vector<1x16x16xf32>
    %71 = vector.shape_cast %70 : vector<1x16x16xf32> to vector<16x16xf32>
    %cst_49 = arith.constant dense<0.000000e+00> : vector<2x16xf32>
    %72 = tpu.matmul %69, %71, %cst_49 {dimension_numbers = #tpu.dot_dimension_numbers<[1], [0], [0], [1], [0, 0, 1, 1], [], []>} : vector<2x16xf32>, vector<16x16xf32>, vector<2x16xf32> -> vector<2x16xf32>
    %73 = arith.addf %68, %72 : vector<2x16xf32>
    %74 = vector.extract_strided_slice %27 {offsets = [16, 0], sizes = [2, 16], strides = [1, 1]} : vector<50x16xf32> to vector<2x16xf32>
    %c8 = arith.constant 8 : index
    %c0_50 = arith.constant 0 : index
    %c0_51 = arith.constant 0 : index
    %75 = vector.load %arg6[%c8, %c0_50, %c0_51] : memref<25x16x16xf32, #tpu.memory_space<vmem>>, vector<1x16x16xf32>
    %76 = vector.shape_cast %75 : vector<1x16x16xf32> to vector<16x16xf32>
    %cst_52 = arith.constant dense<0.000000e+00> : vector<2x16xf32>
    %77 = tpu.matmul %74, %76, %cst_52 {dimension_numbers = #tpu.dot_dimension_numbers<[1], [0], [0], [1], [0, 0, 1, 1], [], []>} : vector<2x16xf32>, vector<16x16xf32>, vector<2x16xf32> -> vector<2x16xf32>
    %78 = arith.addf %73, %77 : vector<2x16xf32>
    %79 = vector.extract_strided_slice %27 {offsets = [18, 0], sizes = [2, 16], strides = [1, 1]} : vector<50x16xf32> to vector<2x16xf32>
    %c9 = arith.constant 9 : index
    %c0_53 = arith.constant 0 : index
    %c0_54 = arith.constant 0 : index
    %80 = vector.load %arg6[%c9, %c0_53, %c0_54] : memref<25x16x16xf32, #tpu.memory_space<vmem>>, vector<1x16x16xf32>
    %81 = vector.shape_cast %80 : vector<1x16x16xf32> to vector<16x16xf32>
    %cst_55 = arith.constant dense<0.000000e+00> : vector<2x16xf32>
    %82 = tpu.matmul %79, %81, %cst_55 {dimension_numbers = #tpu.dot_dimension_numbers<[1], [0], [0], [1], [0, 0, 1, 1], [], []>} : vector<2x16xf32>, vector<16x16xf32>, vector<2x16xf32> -> vector<2x16xf32>
    %83 = arith.addf %78, %82 : vector<2x16xf32>
    %84 = vector.extract_strided_slice %27 {offsets = [20, 0], sizes = [2, 16], strides = [1, 1]} : vector<50x16xf32> to vector<2x16xf32>
    %c10 = arith.constant 10 : index
    %c0_56 = arith.constant 0 : index
    %c0_57 = arith.constant 0 : index
    %85 = vector.load %arg6[%c10, %c0_56, %c0_57] : memref<25x16x16xf32, #tpu.memory_space<vmem>>, vector<1x16x16xf32>
    %86 = vector.shape_cast %85 : vector<1x16x16xf32> to vector<16x16xf32>
    %cst_58 = arith.constant dense<0.000000e+00> : vector<2x16xf32>
    %87 = tpu.matmul %84, %86, %cst_58 {dimension_numbers = #tpu.dot_dimension_numbers<[1], [0], [0], [1], [0, 0, 1, 1], [], []>} : vector<2x16xf32>, vector<16x16xf32>, vector<2x16xf32> -> vector<2x16xf32>
    %88 = arith.addf %83, %87 : vector<2x16xf32>
    %89 = vector.extract_strided_slice %27 {offsets = [22, 0], sizes = [2, 16], strides = [1, 1]} : vector<50x16xf32> to vector<2x16xf32>
    %c11 = arith.constant 11 : index
    %c0_59 = arith.constant 0 : index
    %c0_60 = arith.constant 0 : index
    %90 = vector.load %arg6[%c11, %c0_59, %c0_60] : memref<25x16x16xf32, #tpu.memory_space<vmem>>, vector<1x16x16xf32>
    %91 = vector.shape_cast %90 : vector<1x16x16xf32> to vector<16x16xf32>
    %cst_61 = arith.constant dense<0.000000e+00> : vector<2x16xf32>
    %92 = tpu.matmul %89, %91, %cst_61 {dimension_numbers = #tpu.dot_dimension_numbers<[1], [0], [0], [1], [0, 0, 1, 1], [], []>} : vector<2x16xf32>, vector<16x16xf32>, vector<2x16xf32> -> vector<2x16xf32>
    %93 = arith.addf %88, %92 : vector<2x16xf32>
    %94 = vector.extract_strided_slice %27 {offsets = [24, 0], sizes = [2, 16], strides = [1, 1]} : vector<50x16xf32> to vector<2x16xf32>
    %c12 = arith.constant 12 : index
    %c0_62 = arith.constant 0 : index
    %c0_63 = arith.constant 0 : index
    %95 = vector.load %arg6[%c12, %c0_62, %c0_63] : memref<25x16x16xf32, #tpu.memory_space<vmem>>, vector<1x16x16xf32>
    %96 = vector.shape_cast %95 : vector<1x16x16xf32> to vector<16x16xf32>
    %cst_64 = arith.constant dense<0.000000e+00> : vector<2x16xf32>
    %97 = tpu.matmul %94, %96, %cst_64 {dimension_numbers = #tpu.dot_dimension_numbers<[1], [0], [0], [1], [0, 0, 1, 1], [], []>} : vector<2x16xf32>, vector<16x16xf32>, vector<2x16xf32> -> vector<2x16xf32>
    %98 = arith.addf %93, %97 : vector<2x16xf32>
    %99 = vector.extract_strided_slice %27 {offsets = [26, 0], sizes = [2, 16], strides = [1, 1]} : vector<50x16xf32> to vector<2x16xf32>
    %c13 = arith.constant 13 : index
    %c0_65 = arith.constant 0 : index
    %c0_66 = arith.constant 0 : index
    %100 = vector.load %arg6[%c13, %c0_65, %c0_66] : memref<25x16x16xf32, #tpu.memory_space<vmem>>, vector<1x16x16xf32>
    %101 = vector.shape_cast %100 : vector<1x16x16xf32> to vector<16x16xf32>
    %cst_67 = arith.constant dense<0.000000e+00> : vector<2x16xf32>
    %102 = tpu.matmul %99, %101, %cst_67 {dimension_numbers = #tpu.dot_dimension_numbers<[1], [0], [0], [1], [0, 0, 1, 1], [], []>} : vector<2x16xf32>, vector<16x16xf32>, vector<2x16xf32> -> vector<2x16xf32>
    %103 = arith.addf %98, %102 : vector<2x16xf32>
    %104 = vector.extract_strided_slice %27 {offsets = [28, 0], sizes = [2, 16], strides = [1, 1]} : vector<50x16xf32> to vector<2x16xf32>
    %c14 = arith.constant 14 : index
    %c0_68 = arith.constant 0 : index
    %c0_69 = arith.constant 0 : index
    %105 = vector.load %arg6[%c14, %c0_68, %c0_69] : memref<25x16x16xf32, #tpu.memory_space<vmem>>, vector<1x16x16xf32>
    %106 = vector.shape_cast %105 : vector<1x16x16xf32> to vector<16x16xf32>
    %cst_70 = arith.constant dense<0.000000e+00> : vector<2x16xf32>
    %107 = tpu.matmul %104, %106, %cst_70 {dimension_numbers = #tpu.dot_dimension_numbers<[1], [0], [0], [1], [0, 0, 1, 1], [], []>} : vector<2x16xf32>, vector<16x16xf32>, vector<2x16xf32> -> vector<2x16xf32>
    %108 = arith.addf %103, %107 : vector<2x16xf32>
    %109 = vector.extract_strided_slice %27 {offsets = [30, 0], sizes = [2, 16], strides = [1, 1]} : vector<50x16xf32> to vector<2x16xf32>
    %c15 = arith.constant 15 : index
    %c0_71 = arith.constant 0 : index
    %c0_72 = arith.constant 0 : index
    %110 = vector.load %arg6[%c15, %c0_71, %c0_72] : memref<25x16x16xf32, #tpu.memory_space<vmem>>, vector<1x16x16xf32>
    %111 = vector.shape_cast %110 : vector<1x16x16xf32> to vector<16x16xf32>
    %cst_73 = arith.constant dense<0.000000e+00> : vector<2x16xf32>
    %112 = tpu.matmul %109, %111, %cst_73 {dimension_numbers = #tpu.dot_dimension_numbers<[1], [0], [0], [1], [0, 0, 1, 1], [], []>} : vector<2x16xf32>, vector<16x16xf32>, vector<2x16xf32> -> vector<2x16xf32>
    %113 = arith.addf %108, %112 : vector<2x16xf32>
    %114 = vector.extract_strided_slice %27 {offsets = [32, 0], sizes = [2, 16], strides = [1, 1]} : vector<50x16xf32> to vector<2x16xf32>
    %c16_74 = arith.constant 16 : index
    %c0_75 = arith.constant 0 : index
    %c0_76 = arith.constant 0 : index
    %115 = vector.load %arg6[%c16_74, %c0_75, %c0_76] : memref<25x16x16xf32, #tpu.memory_space<vmem>>, vector<1x16x16xf32>
    %116 = vector.shape_cast %115 : vector<1x16x16xf32> to vector<16x16xf32>
    %cst_77 = arith.constant dense<0.000000e+00> : vector<2x16xf32>
    %117 = tpu.matmul %114, %116, %cst_77 {dimension_numbers = #tpu.dot_dimension_numbers<[1], [0], [0], [1], [0, 0, 1, 1], [], []>} : vector<2x16xf32>, vector<16x16xf32>, vector<2x16xf32> -> vector<2x16xf32>
    %118 = arith.addf %113, %117 : vector<2x16xf32>
    %119 = vector.extract_strided_slice %27 {offsets = [34, 0], sizes = [2, 16], strides = [1, 1]} : vector<50x16xf32> to vector<2x16xf32>
    %c17 = arith.constant 17 : index
    %c0_78 = arith.constant 0 : index
    %c0_79 = arith.constant 0 : index
    %120 = vector.load %arg6[%c17, %c0_78, %c0_79] : memref<25x16x16xf32, #tpu.memory_space<vmem>>, vector<1x16x16xf32>
    %121 = vector.shape_cast %120 : vector<1x16x16xf32> to vector<16x16xf32>
    %cst_80 = arith.constant dense<0.000000e+00> : vector<2x16xf32>
    %122 = tpu.matmul %119, %121, %cst_80 {dimension_numbers = #tpu.dot_dimension_numbers<[1], [0], [0], [1], [0, 0, 1, 1], [], []>} : vector<2x16xf32>, vector<16x16xf32>, vector<2x16xf32> -> vector<2x16xf32>
    %123 = arith.addf %118, %122 : vector<2x16xf32>
    %124 = vector.extract_strided_slice %27 {offsets = [36, 0], sizes = [2, 16], strides = [1, 1]} : vector<50x16xf32> to vector<2x16xf32>
    %c18 = arith.constant 18 : index
    %c0_81 = arith.constant 0 : index
    %c0_82 = arith.constant 0 : index
    %125 = vector.load %arg6[%c18, %c0_81, %c0_82] : memref<25x16x16xf32, #tpu.memory_space<vmem>>, vector<1x16x16xf32>
    %126 = vector.shape_cast %125 : vector<1x16x16xf32> to vector<16x16xf32>
    %cst_83 = arith.constant dense<0.000000e+00> : vector<2x16xf32>
    %127 = tpu.matmul %124, %126, %cst_83 {dimension_numbers = #tpu.dot_dimension_numbers<[1], [0], [0], [1], [0, 0, 1, 1], [], []>} : vector<2x16xf32>, vector<16x16xf32>, vector<2x16xf32> -> vector<2x16xf32>
    %128 = arith.addf %123, %127 : vector<2x16xf32>
    %129 = vector.extract_strided_slice %27 {offsets = [38, 0], sizes = [2, 16], strides = [1, 1]} : vector<50x16xf32> to vector<2x16xf32>
    %c19 = arith.constant 19 : index
    %c0_84 = arith.constant 0 : index
    %c0_85 = arith.constant 0 : index
    %130 = vector.load %arg6[%c19, %c0_84, %c0_85] : memref<25x16x16xf32, #tpu.memory_space<vmem>>, vector<1x16x16xf32>
    %131 = vector.shape_cast %130 : vector<1x16x16xf32> to vector<16x16xf32>
    %cst_86 = arith.constant dense<0.000000e+00> : vector<2x16xf32>
    %132 = tpu.matmul %129, %131, %cst_86 {dimension_numbers = #tpu.dot_dimension_numbers<[1], [0], [0], [1], [0, 0, 1, 1], [], []>} : vector<2x16xf32>, vector<16x16xf32>, vector<2x16xf32> -> vector<2x16xf32>
    %133 = arith.addf %128, %132 : vector<2x16xf32>
    %134 = vector.extract_strided_slice %27 {offsets = [40, 0], sizes = [2, 16], strides = [1, 1]} : vector<50x16xf32> to vector<2x16xf32>
    %c20 = arith.constant 20 : index
    %c0_87 = arith.constant 0 : index
    %c0_88 = arith.constant 0 : index
    %135 = vector.load %arg6[%c20, %c0_87, %c0_88] : memref<25x16x16xf32, #tpu.memory_space<vmem>>, vector<1x16x16xf32>
    %136 = vector.shape_cast %135 : vector<1x16x16xf32> to vector<16x16xf32>
    %cst_89 = arith.constant dense<0.000000e+00> : vector<2x16xf32>
    %137 = tpu.matmul %134, %136, %cst_89 {dimension_numbers = #tpu.dot_dimension_numbers<[1], [0], [0], [1], [0, 0, 1, 1], [], []>} : vector<2x16xf32>, vector<16x16xf32>, vector<2x16xf32> -> vector<2x16xf32>
    %138 = arith.addf %133, %137 : vector<2x16xf32>
    %139 = vector.extract_strided_slice %27 {offsets = [42, 0], sizes = [2, 16], strides = [1, 1]} : vector<50x16xf32> to vector<2x16xf32>
    %c21 = arith.constant 21 : index
    %c0_90 = arith.constant 0 : index
    %c0_91 = arith.constant 0 : index
    %140 = vector.load %arg6[%c21, %c0_90, %c0_91] : memref<25x16x16xf32, #tpu.memory_space<vmem>>, vector<1x16x16xf32>
    %141 = vector.shape_cast %140 : vector<1x16x16xf32> to vector<16x16xf32>
    %cst_92 = arith.constant dense<0.000000e+00> : vector<2x16xf32>
    %142 = tpu.matmul %139, %141, %cst_92 {dimension_numbers = #tpu.dot_dimension_numbers<[1], [0], [0], [1], [0, 0, 1, 1], [], []>} : vector<2x16xf32>, vector<16x16xf32>, vector<2x16xf32> -> vector<2x16xf32>
    %143 = arith.addf %138, %142 : vector<2x16xf32>
    %144 = vector.extract_strided_slice %27 {offsets = [44, 0], sizes = [2, 16], strides = [1, 1]} : vector<50x16xf32> to vector<2x16xf32>
    %c22 = arith.constant 22 : index
    %c0_93 = arith.constant 0 : index
    %c0_94 = arith.constant 0 : index
    %145 = vector.load %arg6[%c22, %c0_93, %c0_94] : memref<25x16x16xf32, #tpu.memory_space<vmem>>, vector<1x16x16xf32>
    %146 = vector.shape_cast %145 : vector<1x16x16xf32> to vector<16x16xf32>
    %cst_95 = arith.constant dense<0.000000e+00> : vector<2x16xf32>
    %147 = tpu.matmul %144, %146, %cst_95 {dimension_numbers = #tpu.dot_dimension_numbers<[1], [0], [0], [1], [0, 0, 1, 1], [], []>} : vector<2x16xf32>, vector<16x16xf32>, vector<2x16xf32> -> vector<2x16xf32>
    %148 = arith.addf %143, %147 : vector<2x16xf32>
    %149 = vector.extract_strided_slice %27 {offsets = [46, 0], sizes = [2, 16], strides = [1, 1]} : vector<50x16xf32> to vector<2x16xf32>
    %c23 = arith.constant 23 : index
    %c0_96 = arith.constant 0 : index
    %c0_97 = arith.constant 0 : index
    %150 = vector.load %arg6[%c23, %c0_96, %c0_97] : memref<25x16x16xf32, #tpu.memory_space<vmem>>, vector<1x16x16xf32>
    %151 = vector.shape_cast %150 : vector<1x16x16xf32> to vector<16x16xf32>
    %cst_98 = arith.constant dense<0.000000e+00> : vector<2x16xf32>
    %152 = tpu.matmul %149, %151, %cst_98 {dimension_numbers = #tpu.dot_dimension_numbers<[1], [0], [0], [1], [0, 0, 1, 1], [], []>} : vector<2x16xf32>, vector<16x16xf32>, vector<2x16xf32> -> vector<2x16xf32>
    %153 = arith.addf %148, %152 : vector<2x16xf32>
    %154 = vector.extract_strided_slice %27 {offsets = [48, 0], sizes = [2, 16], strides = [1, 1]} : vector<50x16xf32> to vector<2x16xf32>
    %c24 = arith.constant 24 : index
    %c0_99 = arith.constant 0 : index
    %c0_100 = arith.constant 0 : index
    %155 = vector.load %arg6[%c24, %c0_99, %c0_100] : memref<25x16x16xf32, #tpu.memory_space<vmem>>, vector<1x16x16xf32>
    %156 = vector.shape_cast %155 : vector<1x16x16xf32> to vector<16x16xf32>
    %cst_101 = arith.constant dense<0.000000e+00> : vector<2x16xf32>
    %157 = tpu.matmul %154, %156, %cst_101 {dimension_numbers = #tpu.dot_dimension_numbers<[1], [0], [0], [1], [0, 0, 1, 1], [], []>} : vector<2x16xf32>, vector<16x16xf32>, vector<2x16xf32> -> vector<2x16xf32>
    %158 = arith.addf %153, %157 : vector<2x16xf32>
    %cst_102 = arith.constant 0.000000e+00 : f32
    %159 = vector.broadcast %cst_102 : f32 to vector<2x16xf32>
    %160 = arith.maximumf %158, %159 : vector<2x16xf32>
    %c0_103 = arith.constant 0 : index
    %c0_104 = arith.constant 0 : index
    %161 = vector.load %arg9[%c0_103, %c0_104] : memref<1x16xf32, #tpu.memory_space<vmem>>, vector<1x16xf32>
    %162 = vector.broadcast %161 : vector<1x16xf32> to vector<2x16xf32>
    %163 = arith.mulf %160, %162 : vector<2x16xf32>
    %cst_105 = arith.constant dense<0.000000e+00> : vector<2xf32>
    %164 = vector.multi_reduction <add>, %163, %cst_105 [1] : vector<2x16xf32> to vector<2xf32>
    %165 = vector.shape_cast %164 : vector<2xf32> to vector<2x1xf32>
    %c0_106 = arith.constant 0 : index
    %c0_107 = arith.constant 0 : index
    %166 = vector.load %arg10[%c0_106, %c0_107] : memref<1x1xf32, #tpu.memory_space<vmem>>, vector<1x1xf32>
    %167 = vector.broadcast %166 : vector<1x1xf32> to vector<2x1xf32>
    %168 = arith.addf %165, %167 : vector<2x1xf32>
    %c0_108 = arith.constant 0 : index
    %c0_109 = arith.constant 0 : index
    %169 = vector.load %arg11[%c0_108, %c0_109] : memref<2x1xf32, #tpu.memory_space<vmem>>, vector<2x1xf32>
    tpu.vector_store %arg11[%c0_108, %c0_109], %168 {strides = array<i32>} : memref<2x1xf32, #tpu.memory_space<vmem>>, vector<2x1xf32>,
    return
  }
}

</mosaic_0001>

<bundles_post_ra>
// kernel: critic_forward.1
= control target key start
LH: loop header
LB: loop body
LE: loop exit
PB: predicated region body
PF: predicated region fallthrough
CT: control target
= control target key end

     0   :  { %v3746_v0 = vmov 0.0|0.0   ;;  %vm3747_vm0 = vmmov 0   ;;  %v3748_v3 = vmov 0.0   ;;  %vm74_vm1 = vcmask 130048   ;;  %s4484_s2 = inlined_call_operand.vmem [shape: f32[16,16], index: 2, kind: input, shape index: {}]   ;;  %s4485_s0 = inlined_call_operand.vmem [shape: f32[200,16], index: 0, kind: input, shape index: {}]   ;;  %s4486_s4 = inlined_call_operand.vmem [shape: f32[64,16], index: 4, kind: input, shape index: {}]   ;;  %s4487_s3 = inlined_call_operand.vmem [shape: f32[1,16], index: 3, kind: input, shape index: {}]   ;;  %s4488_s7 = inlined_call_operand.vmem [shape: f32[4,16], index: 7, kind: input, shape index: {}]   ;;  %s4489_s1 = inlined_call_operand.vmem [shape: f32[2,4], index: 1, kind: input, shape index: {}]   ;;  %s4490_s6 = inlined_call_operand.vmem [shape: f32[25,16,16], index: 6, kind: input, shape index: {}]   ;;  %s4491_s5 = inlined_call_operand.vmem [shape: f32[1,16], index: 5, kind: input, shape index: {}]   ;;  %s4492_s10 = inlined_call_operand.<no memory space> [shape: f32[1,1], index: 10, kind: input, shape index: {}]   ;;  %s4493_s8 = inlined_call_operand.vmem [shape: f32[1,16], index: 8, kind: input, shape index: {}]   ;;  %s4494_s9 = inlined_call_operand.vmem [shape: f32[1,16], index: 9, kind: input, shape index: {}]   ;;  %s4495_s11 = inlined_call_operand.vmem [shape: f32[2,1], index: 11, kind: output, shape index: {}]  }
   0x1   :  { %3600 = vmatprep.subr.bf16.mxu0 %v3746_v0  ;;  %v65_v1 = vld [vmem:[%s4484_s2] sm:$0xff]  ;;  %v66_v2 = vld [vmem:[%s4484_s2 + $0x8] sm:$0xff]  ;;  %3245 = vmatprep.mubr.msk.f32.mxu0 %vm3747_vm0, %v3748_v3  ;;  %v54_v6 = vld [vmem:[%s4485_s0 + $0x70] sm:$0xff]  ;;  %vm632_vm2 = vcmask 1043456   ;;  %vm775_vm3 = vcmask 1041408   ;;  %vm376_vm4 = vcmask 1045504  }
   0x2   :  { %v3601_v4 = vpack.c.bf16 %v66_v2, %v65_v1  ;;  %3690 = vmatprep.subr.bf16.mxu1 %v3746_v0  ;;  %3287 = vmatprep.mubr.msk.f32.mxu1 %vm3747_vm0, %v3748_v3  ;;  %v40_v5 = vld [vmem:[%s4485_s0] sm:$0xff]  ;;  %v41_v7 = vld [vmem:[%s4485_s0 + $0x8] sm:$0xff]  ;;  %v55_v8 = vld [vmem:[%s4485_s0 + $0x78] sm:$0xff]  ;;  %vm940_vm5 = vcmask 31744   ;;  %vm2950_vm6 = vcmask 123904   ;;  %vm2962_vm7 = vcmask 1024  }
   0x3   :  { %v367_v9 = vld [vmem:[%s4486_s4 + $0x10] sm:$0xff]  ;;  %v368_v10 = vld [vmem:[%s4486_s4 + $0x18] sm:$0xff]  ;;  %v56_v13 = vld [vmem:[%s4485_s0 + $0x80] sm:$0xff] }
   0x4   :  { %3602 = vmatpush3.bf16.msra.mxu0 %v3601_v4  ;;  %3691 = vmatpush3.bf16.msra.mxu1 %v3601_v4  ;;  %v3604_v11 = vpack.c.bf16 %v368_v10, %v367_v9  ;;  %v42_v12 = vld [vmem:[%s4485_s0 + $0x10] sm:$0xff]  ;;  %v43_v14 = vld [vmem:[%s4485_s0 + $0x18] sm:$0xff]  ;;  %v57_v15 = vld [vmem:[%s4485_s0 + $0x88] sm:$0xff] }
   0x5   :  { %3603 = vmatprep.subr.bf16.mxu1 %v3746_v0  ;;  %3420 = vmatprep.subr.mxu0 %v3748_v3  ;;  %v44_v16 = vld [vmem:[%s4485_s0 + $0x20] sm:$0xff]  ;;  %v58_v17 = vld [vmem:[%s4485_s0 + $0x90] sm:$0xff]  ;;  %v45_v18 = vld [vmem:[%s4485_s0 + $0x28] sm:$0xff] }
   0x6   :  { %v59_v19 = vld [vmem:[%s4485_s0 + $0x98] sm:$0xff]  ;;  %v46_v20 = vld [vmem:[%s4485_s0 + $0x30] sm:$0xff]  ;;  %v60_v21 = vld [vmem:[%s4485_s0 + $0xa0] sm:$0xff] }
   0x7   :  { %3246 = vmatmul.mubr.msk.f32.vlgmr.msra.gmra.mrb[0].mxu0 %vm74_vm1, %v40_v5  ;;  %3288 = vmatmul.mubr.msk.f32.vlgmr.msra.gmra.mrb[0].mxu1 %vm74_vm1, %v54_v6  ;;  %v47_v22 = vld [vmem:[%s4485_s0 + $0x38] sm:$0xff]  ;;  %v61_v23 = vld [vmem:[%s4485_s0 + $0xa8] sm:$0xff]  ;;  %v48_v24 = vld [vmem:[%s4485_s0 + $0x40] sm:$0xff] }
   0x8   :  { %3248 = vmatprep.mubr.msk.f32.mxu0 %vm3747_vm0, %v3748_v3  ;;  %3290 = vmatprep.mubr.msk.f32.mxu1 %vm3747_vm0, %v3748_v3  ;;  %v62_v25 = vld [vmem:[%s4485_s0 + $0xb0] sm:$0xff]  ;;  %v49_v26 = vld [vmem:[%s4485_s0 + $0x48] sm:$0xff]  ;;  %v63_v27 = vld [vmem:[%s4485_s0 + $0xb8] sm:$0xff] }
   0x9   :  { %3605 = vmatpush3.bf16.msra.mxu1 %v3604_v11  ;;  %v50_v28 = vld [vmem:[%s4485_s0 + $0x50] sm:$0xff]  ;;  %v64_v29 = vld [vmem:[%s4485_s0 + $0xc0] sm:$0xff]  ;;  %v51_v30 = vld [vmem:[%s4485_s0 + $0x58] sm:$0xff] }
   0xa   :  { %3606 = vmatprep.subr.bf16.mxu1 %v3746_v0  ;;  %v52_v31 = vld [vmem:[%s4485_s0 + $0x60] sm:$0xff]  ;;  %v53_v32 = vld [vmem:[%s4485_s0 + $0x68] sm:$0xff] }
   0xb   :  { %3249 = vmatmul.mubr.msk.f32.gmra.mrb[2].mxu0 %vm74_vm1, %v41_v7  ;;  %3291 = vmatmul.mubr.msk.f32.gmra.mrb[2].mxu1 %vm74_vm1, %v55_v8  ;;  %v3983_v33 = vld [vmem:[%s4487_s3] ss:$0 sm:$0xff] }
   0xc   :  { %3251 = vmatprep.mubr.msk.f32.mxu0 %vm3747_vm0, %v3748_v3  ;;  %3293 = vmatprep.mubr.msk.f32.mxu1 %vm3747_vm0, %v3748_v3 }
   0xf   :  { %3252 = vmatmul.mubr.msk.f32.gmra.mrb[4].mxu0 %vm74_vm1, %v42_v12  ;;  %3294 = vmatmul.mubr.msk.f32.gmra.mrb[4].mxu1 %vm74_vm1, %v56_v13 }
  0x10   :  { %3254 = vmatprep.mubr.msk.f32.mxu0 %vm3747_vm0, %v3748_v3  ;;  %3296 = vmatprep.mubr.msk.f32.mxu1 %vm3747_vm0, %v3748_v3 }
  0x13   :  { %3255 = vmatmul.mubr.msk.f32.gmra.mrb[6].mxu0 %vm74_vm1, %v43_v14  ;;  %3297 = vmatmul.mubr.msk.f32.gmra.mrb[6].mxu1 %vm74_vm1, %v57_v15 }
  0x14   :  { %3257 = vmatprep.mubr.msk.f32.mxu0 %vm3747_vm0, %v3748_v3  ;;  %3299 = vmatprep.mubr.msk.f32.mxu1 %vm3747_vm0, %v3748_v3 }
  0x17   :  { %3258 = vmatmul.mubr.msk.f32.gmra.mrb[8].mxu0 %vm74_vm1, %v44_v16  ;;  %3300 = vmatmul.mubr.msk.f32.gmra.mrb[8].mxu1 %vm74_vm1, %v58_v17 }
  0x18   :  { %3260 = vmatprep.mubr.msk.f32.mxu0 %vm3747_vm0, %v3748_v3  ;;  %3302 = vmatprep.mubr.msk.f32.mxu1 %vm3747_vm0, %v3748_v3 }
  0x1b   :  { %3261 = vmatmul.mubr.msk.f32.gmra.mrb[10].mxu0 %vm74_vm1, %v45_v18  ;;  %3303 = vmatmul.mubr.msk.f32.gmra.mrb[10].mxu1 %vm74_vm1, %v59_v19 }
  0x1c   :  { %3263 = vmatprep.mubr.msk.f32.mxu0 %vm3747_vm0, %v3748_v3  ;;  %3305 = vmatprep.mubr.msk.f32.mxu1 %vm3747_vm0, %v3748_v3 }
  0x1f   :  { %3264 = vmatmul.mubr.msk.f32.gmra.mrb[12].mxu0 %vm74_vm1, %v46_v20  ;;  %3306 = vmatmul.mubr.msk.f32.gmra.mrb[12].mxu1 %vm74_vm1, %v60_v21 }
  0x20   :  { %3266 = vmatprep.mubr.msk.f32.mxu0 %vm3747_vm0, %v3748_v3  ;;  %3308 = vmatprep.mubr.msk.f32.mxu1 %vm3747_vm0, %v3748_v3 }
  0x23   :  { %3267 = vmatmul.mubr.msk.f32.gmra.mrb[14].mxu0 %vm74_vm1, %v47_v22  ;;  %3309 = vmatmul.mubr.msk.f32.gmra.mrb[14].mxu1 %vm74_vm1, %v61_v23 }
  0x24   :  { %3269 = vmatprep.mubr.msk.f32.mxu0 %vm3747_vm0, %v3748_v3  ;;  %3311 = vmatprep.mubr.msk.f32.mxu1 %vm3747_vm0, %v3748_v3 }
  0x27   :  { %3270 = vmatmul.mubr.msk.f32.gmra.mrb[16].mxu0 %vm74_vm1, %v48_v24  ;;  %3312 = vmatmul.mubr.msk.f32.gmra.mrb[16].mxu1 %vm74_vm1, %v62_v25 }
  0x28   :  { %3272 = vmatprep.mubr.msk.f32.mxu0 %vm3747_vm0, %v3748_v3  ;;  %3314 = vmatprep.mubr.msk.f32.mxu1 %vm3747_vm0, %v3748_v3 }
  0x2b   :  { %3273 = vmatmul.mubr.msk.f32.gmra.mrb[18].mxu0 %vm74_vm1, %v49_v26  ;;  %3315 = vmatmul.mubr.msk.f32.gmra.mrb[18].mxu1 %vm74_vm1, %v63_v27 }
  0x2c   :  { %3275 = vmatprep.mubr.msk.f32.mxu0 %vm3747_vm0, %v3748_v3  ;;  %3317 = vmatprep.mubr.msk.f32.mxu1 %vm3747_vm0, %v3748_v3 }
  0x2f   :  { %3276 = vmatmul.mubr.msk.f32.gmra.mrb[20].mxu0 %vm74_vm1, %v50_v28  ;;  %3318 = vmatmul.mubr.msk.f32.gmra.mrb[20].mxu1 %vm74_vm1, %v64_v29 }
  0x30   :  { %3278 = vmatprep.mubr.msk.f32.mxu0 %vm3747_vm0, %v3748_v3  ;;  %3324 = vmatprep.mubr.msk.f32.mxu1 %vm3747_vm0, %v3748_v3 }
  0x33   :  { %3279 = vmatmul.mubr.msk.f32.gmra.mrb[22].mxu0 %vm74_vm1, %v51_v30 }
  0x34   :  { %3281 = vmatprep.mubr.msk.f32.mxu0 %vm3747_vm0, %v3748_v3 }
  0x37   :  { %3282 = vmatmul.mubr.msk.f32.gmra.mrb[24].mxu0 %vm74_vm1, %v52_v31 }
  0x38   :  { %3284 = vmatprep.mubr.msk.f32.mxu0 %vm3747_vm0, %v3748_v3 }
  0x3b   :  { %3285 = vmatmul.mubr.msk.f32.gmra.mrb[26].mxu0 %vm74_vm1, %v53_v32  ;;  %v365_v32 = vld [vmem:[%s4486_s4] sm:$0xff] }
  0x3c   :  { %3422 = vmatprep.mubr.msk.f32.mxu0 %vm3747_vm0, %v3748_v3 }
  0xda   :  { %v3985_v34 = vpop.f32.mrb[0].mxu0  ;;  %v286_v35 = vpop.f32.mrb[0].mxu1 }
  0xdb   :  { %v3247_v36 = vpop.f32.mrb[1].mxu0  ;;  %v287_v37 = vadd.f32 %v3983_v33, %v286_v35  ;;  %v3289_v38 = vpop.f32.mrb[1].mxu1  ;;  %v366_v35 = vld [vmem:[%s4486_s4 + $0x8] sm:$0xff] }
  0xdd   :  { %v354_v42 = vmax.f32 %v287_v37, 0.0 }
  0xde   :  { %v3988_v39 = vpop.f32.mrb[2].mxu0  ;;  %v291_v40 = vpop.f32.mrb[2].mxu1 }
  0xdf   :  { %v3250_v41 = vpop.f32.mrb[3].mxu0  ;;  %v292_v43 = vadd.f32 %v3983_v33, %v291_v40  ;;  %v3292_v44 = vpop.f32.mrb[3].mxu1  ;;  %v3993_v49 = vrot.slane %v354_v42, 4 }
  0xe1   :  { %v355_v45 = vmax.f32 %v292_v43, 0.0 }
  0xe2   :  { %v3991_v46 = vpop.f32.mrb[4].mxu0  ;;  %v296_v47 = vpop.f32.mrb[4].mxu1 }
  0xe3   :  { %v3253_v48 = vpop.f32.mrb[5].mxu0  ;;  %v638_v50 = vrot.slane %v355_v45, 4  ;;  %v297_v51 = vadd.f32 %v3983_v33, %v296_v47  ;;  %v3295_v52 = vpop.f32.mrb[5].mxu1  ;;  %v3607_v45 = vpack.c.bf16 %v366_v35, %v365_v32 }
  0xe5   :  { %v356_v53 = vmax.f32 %v297_v51, 0.0  ;;  %v3998_v54 = vsel %vm632_vm2, %v3993_v49, %v638_v50 }
  0xe6   :  { %v4000_v55 = vpop.f32.mrb[6].mxu0  ;;  %v301_v56 = vpop.f32.mrb[6].mxu1 }
  0xe7   :  { %v3256_v57 = vpop.f32.mrb[7].mxu0  ;;  %v640_v58 = vrot.slane %v356_v53, 4  ;;  %v302_v59 = vadd.f32 %v3983_v33, %v301_v56  ;;  %v3298_v60 = vpop.f32.mrb[7].mxu1 }
  0xe9   :  { %v357_v61 = vmax.f32 %v302_v59, 0.0  ;;  %v4004_v62 = vsel %vm632_vm2, %v638_v50, %v640_v58 }
  0xea   :  { %v4006_v63 = vpop.f32.mrb[8].mxu0  ;;  %v306_v1 = vpop.f32.mrb[8].mxu1 }
  0xeb   :  { %v3259_v2 = vpop.f32.mrb[9].mxu0  ;;  %v642_v4 = vrot.slane %v357_v61, 4  ;;  %v307_v5 = vadd.f32 %v3983_v33, %v306_v1  ;;  %v3301_v6 = vpop.f32.mrb[9].mxu1 }
  0xed   :  { %v358_v7 = vmax.f32 %v307_v5, 0.0  ;;  %v4010_v8 = vsel %vm632_vm2, %v640_v58, %v642_v4 }
  0xee   :  { %v4012_v9 = vpop.f32.mrb[10].mxu0  ;;  %v311_v10 = vpop.f32.mrb[10].mxu1 }
  0xef   :  { %v3262_v11 = vpop.f32.mrb[11].mxu0  ;;  %v4014_v12 = vrot.slane %v358_v7, 4  ;;  %v312_v13 = vadd.f32 %v3983_v33, %v311_v10  ;;  %v3304_v14 = vpop.f32.mrb[11].mxu1  ;;  %v776_v15 = vrot.slane %v358_v7, 6 }
  0xf1   :  { %v359_v16 = vmax.f32 %v312_v13, 0.0  ;;  %v4019_v17 = vsel %vm632_vm2, %v642_v4, %v4014_v12 }
  0xf2   :  { %v246_v18 = vpop.f32.mrb[12].mxu0  ;;  %v316_v19 = vpop.f32.mrb[12].mxu1 }
  0xf3   :  { %v4022_v20 = vadd.f32 %v3983_v33, %v246_v18  ;;  %v3265_v21 = vpop.f32.mrb[13].mxu0  ;;  %v777_v22 = vrot.slane %v359_v16, 6  ;;  %v317_v23 = vadd.f32 %v3983_v33, %v316_v19  ;;  %v3307_v24 = vpop.f32.mrb[13].mxu1 }
  0xf5   :  { %v4026_v25 = vsel %vm775_vm3, %v776_v15, %v777_v22  ;;  %v360_v26 = vmax.f32 %v317_v23, 0.0  ;;  %v346_v27 = vmax.f32 %v4022_v20, 0.0 }
  0xf6   :  { %v251_v28 = vpop.f32.mrb[14].mxu0  ;;  %v321_v29 = vpop.f32.mrb[14].mxu1 }
  0xf7   :  { %v252_v30 = vadd.f32 %v3983_v33, %v251_v28  ;;  %v3268_v31 = vpop.f32.mrb[15].mxu0  ;;  %v779_v36 = vrot.slane %v360_v26, 6  ;;  %v322_v37 = vadd.f32 %v3983_v33, %v321_v29  ;;  %v3310_v38 = vpop.f32.mrb[15].mxu1  ;;  %v377_v43 = vrot.slane %v346_v27, 2 }
  0xf9   :  { %v347_v40 = vmax.f32 %v252_v30, 0.0  ;;  %v361_v41 = vmax.f32 %v322_v37, 0.0  ;;  %v4038_v42 = vsel %vm775_vm3, %v777_v22, %v779_v36 }
  0xfa   :  { %v256_v44 = vpop.f32.mrb[16].mxu0  ;;  %v326_v47 = vpop.f32.mrb[16].mxu1 }
  0xfb   :  { %v378_v48 = vrot.slane %v347_v40, 2  ;;  %v257_v50 = vadd.f32 %v3983_v33, %v256_v44  ;;  %v3271_v51 = vpop.f32.mrb[17].mxu0  ;;  %v781_v52 = vrot.slane %v361_v41, 6  ;;  %v327_v53 = vadd.f32 %v3983_v33, %v326_v47  ;;  %v3313_v56 = vpop.f32.mrb[17].mxu1 }
  0xfd   :  { %v379_v57 = vsel %vm376_vm4, %v377_v43, %v378_v48  ;;  %v348_v58 = vmax.f32 %v257_v50, 0.0  ;;  %v362_v59 = vmax.f32 %v327_v53, 0.0  ;;  %v4046_v60 = vsel %vm775_vm3, %v779_v36, %v781_v52 }
  0xfe   :  { %v261_v61 = vpop.f32.mrb[18].mxu0  ;;  %3325 = vmatmul.mubr.msk.f32.vlgmr.msra.gmra.mrb[22].mxu1 %vm74_vm1, %v379_v57  ;;  %v331_v1 = vpop.f32.mrb[18].mxu1 }
  0xff   :  { %v380_v2 = vrot.slane %v348_v58, 2  ;;  %v262_v4 = vadd.f32 %v3983_v33, %v261_v61  ;;  %3608 = vmatpush3.bf16.msra.mxu1 %v3607_v45  ;;  %v3274_v5 = vpop.f32.mrb[19].mxu0  ;;  %3327 = vmatprep.mubr.msk.f32.mxu1 %vm3747_vm0, %v3748_v3  ;;  %v783_v6 = vrot.slane %v362_v59, 6  ;;  %v332_v7 = vadd.f32 %v3983_v33, %v331_v1  ;;  %v3316_v10 = vpop.f32.mrb[19].mxu1 }
 0x100   :  { %3609 = vmatprep.subr.bf16.mxu1 %v3746_v0  ;;  %v625_v5 = vld [vmem:[%s4486_s4 + $0x28] sm:$0xff] }
 0x101   :  { %v349_v11 = vmax.f32 %v262_v4, 0.0  ;;  %v381_v13 = vsel %vm376_vm4, %v378_v48, %v380_v2  ;;  %v363_v14 = vmax.f32 %v332_v7, 0.0  ;;  %v4056_v15 = vsel %vm775_vm3, %v781_v52, %v783_v6  ;;  %v624_v4 = vld [vmem:[%s4486_s4 + $0x20] sm:$0xff] }
 0x102   :  { %v266_v16 = vpop.f32.mrb[20].mxu0  ;;  %3328 = vmatmul.mubr.msk.f32.gmra.mrb[24].mxu1 %vm74_vm1, %v381_v13  ;;  %v336_v18 = vpop.f32.mrb[20].mxu1  ;;  %v3610_v10 = vpack.c.bf16 %v625_v5, %v624_v4 }
 0x103   :  { %v382_v19 = vrot.slane %v349_v11, 2  ;;  %v267_v21 = vadd.f32 %v3983_v33, %v266_v16  ;;  %v3277_v22 = vpop.f32.mrb[21].mxu0  ;;  %3330 = vmatprep.mubr.msk.f32.mxu1 %vm3747_vm0, %v3748_v3  ;;  %v785_v23 = vrot.slane %v363_v14, 6  ;;  %v337_v24 = vadd.f32 %v3983_v33, %v336_v18  ;;  %v3319_v26 = vpop.f32.mrb[21].mxu1 }
 0x104   :  { %v222_v11 = vadd.f32 %v3983_v33, %v3988_v39  ;;  %v232_v39 = vadd.f32 %v3983_v33, %v4000_v55 }
 0x105   :  { %v350_v28 = vmax.f32 %v267_v21, 0.0  ;;  %v383_v29 = vsel %vm376_vm4, %v380_v2, %v382_v19  ;;  %v364_v30 = vmax.f32 %v337_v24, 0.0  ;;  %v4065_v31 = vsel %vm775_vm3, %v783_v6, %v785_v23  ;;  %v768_v21 = vld [vmem:[%s4486_s4 + $0x38] sm:$0xff] }
 0x106   :  { %v271_v32 = vpop.f32.mrb[22].mxu0  ;;  %3331 = vmatmul.mubr.msk.f32.gmra.mrb[26].mxu1 %vm74_vm1, %v383_v29  ;;  %v217_v2 = vadd.f32 %v3983_v33, %v3985_v34  ;;  %v341_v13 = vmax.f32 %v222_v11, 0.0  ;;  %v343_v16 = vmax.f32 %v232_v39, 0.0 }
 0x107   :  { %v384_v35 = vrot.slane %v350_v28, 2  ;;  %v272_v36 = vadd.f32 %v3983_v33, %v271_v32  ;;  %v3280_v37 = vpop.f32.mrb[23].mxu0  ;;  %3333 = vmatprep.mubr.msk.f32.mxu1 %vm3747_vm0, %v3748_v3  ;;  %v4071_v38 = vrot.slane %v364_v30, 6 }
 0x108   :  { %v340_v34 = vmax.f32 %v217_v2, 0.0 }
 0x109   :  { %v351_v40 = vmax.f32 %v272_v36, 0.0  ;;  %v385_v41 = vsel %vm376_vm4, %v382_v19, %v384_v35  ;;  %v4076_v43 = vsel %vm775_vm3, %v785_v23, %v4071_v38  ;;  %v242_v19 = vadd.f32 %v3983_v33, %v4012_v9  ;;  %v1018_v9 = vld [vmem:[%s4490_s6 + $0x8] sm:$0xff] }
 0x10a   :  { %v276_v44 = vpop.f32.mrb[24].mxu0  ;;  %3334 = vmatmul.mubr.msk.f32.gmra.mrb[28].mxu1 %vm74_vm1, %v385_v41 }
 0x10b   :  { %v386_v45 = vrot.slane %v351_v40, 2  ;;  %v277_v47 = vadd.f32 %v3983_v33, %v276_v44  ;;  %v3283_v48 = vpop.f32.mrb[25].mxu0  ;;  %3336 = vmatprep.mubr.msk.f32.mxu1 %vm3747_vm0, %v3748_v3  ;;  %v345_v55 = vmax.f32 %v242_v19, 0.0 }
 0x10d   :  { %v352_v50 = vmax.f32 %v277_v47, 0.0  ;;  %v387_v51 = vsel %vm376_vm4, %v384_v35, %v386_v45 }
 0x10e   :  { %v281_v52 = vpop.f32.mrb[26].mxu0  ;;  %3337 = vmatmul.mubr.msk.f32.gmra.mrb[30].mxu1 %vm74_vm1, %v387_v51 }
 0x10f   :  { %v388_v53 = vrot.slane %v352_v50, 2  ;;  %v282_v56 = vadd.f32 %v3983_v33, %v281_v52  ;;  %3339 = vmatprep.mubr.msk.f32.mxu1 %vm3747_vm0, %v3748_v3  ;;  %v3286_v57 = vpop.f32.mrb[27].mxu0  ;;  %v633_v61 = vrot.slane %v352_v50, 4 }
 0x111   :  { %v353_v58 = vmax.f32 %v282_v56, 0.0  ;;  %v389_v59 = vsel %vm376_vm4, %v386_v45, %v388_v53 }
 0x112   :  { %3340 = vmatmul.mubr.msk.f32.gmra.mrb[32].mxu1 %vm74_vm1, %v389_v59 }
 0x113   :  { %v634_v1 = vrot.slane %v353_v58, 4  ;;  %3342 = vmatprep.mubr.msk.f32.mxu1 %vm3747_vm0, %v3748_v3 }
 0x115   :  { %v635_v6 = vsel %vm632_vm2, %v633_v61, %v634_v1  ;;  %v637_v7 = vsel %vm632_vm2, %v634_v1, %v3993_v49  ;;  %v227_v49 = vadd.f32 %v3983_v33, %v3991_v46  ;;  %v237_v46 = vadd.f32 %v3983_v33, %v4006_v63  ;;  %v767_v63 = vld [vmem:[%s4486_s4 + $0x30] sm:$0xff] }
 0x116   :  { %3343 = vmatmul.mubr.msk.f32.gmra.mrb[34].mxu1 %vm74_vm1, %v388_v53  ;;  %v3613_v33 = vpack.c.bf16 %v768_v21, %v767_v63 }
 0x117   :  { %3349 = vmatprep.mubr.msk.f32.mxu1 %vm3747_vm0, %v3748_v3  ;;  %v342_v14 = vmax.f32 %v227_v49, 0.0  ;;  %v344_v18 = vmax.f32 %v237_v46, 0.0 }
 0x11a   :  { %3350 = vmatmul.mubr.msk.f32.vlgmr.msra.gmra.mrb[36].mxu1 %vm74_vm1, %v340_v34 }
 0x11b   :  { %3611 = vmatpush3.bf16.msra.mxu1 %v3610_v10  ;;  %3352 = vmatprep.mubr.msk.f32.mxu1 %vm3747_vm0, %v3748_v3 }
 0x11c   :  { %3612 = vmatprep.subr.bf16.mxu1 %v3746_v0 }
 0x11e   :  { %3353 = vmatmul.mubr.msk.f32.gmra.mrb[38].mxu1 %vm74_vm1, %v341_v13 }
 0x11f   :  { %3355 = vmatprep.mubr.msk.f32.mxu1 %vm3747_vm0, %v3748_v3 }
 0x122   :  { %3356 = vmatmul.mubr.msk.f32.gmra.mrb[40].mxu1 %vm74_vm1, %v342_v14 }
 0x123   :  { %3358 = vmatprep.mubr.msk.f32.mxu1 %vm3747_vm0, %v3748_v3 }
 0x126   :  { %3359 = vmatmul.mubr.msk.f32.gmra.mrb[42].mxu1 %vm74_vm1, %v343_v16 }
 0x127   :  { %3361 = vmatprep.mubr.msk.f32.mxu1 %vm3747_vm0, %v3748_v3 }
 0x12a   :  { %3362 = vmatmul.mubr.msk.f32.gmra.mrb[44].mxu1 %vm74_vm1, %v344_v18 }
 0x12b   :  { %3364 = vmatprep.mubr.msk.f32.mxu1 %vm3747_vm0, %v3748_v3 }
 0x12e   :  { %3365 = vmatmul.mubr.msk.f32.gmra.mrb[46].mxu1 %vm74_vm1, %v345_v55 }
 0x12f   :  { %3367 = vmatprep.mubr.msk.f32.mxu1 %vm3747_vm0, %v3748_v3 }
 0x132   :  { %3368 = vmatmul.mubr.msk.f32.gmra.mrb[48].mxu1 %vm74_vm1, %v346_v27 }
 0x133   :  { %3374 = vmatprep.mubr.msk.f32.mxu1 %vm3747_vm0, %v3748_v3 }
 0x136   :  { %3375 = vmatmul.mubr.msk.f32.vlgmr.msra.gmra.mrb[50].mxu1 %vm74_vm1, %v635_v6 }
 0x137   :  { %3614 = vmatpush3.bf16.msra.mxu1 %v3613_v33  ;;  %3377 = vmatprep.mubr.msk.f32.mxu1 %vm3747_vm0, %v3748_v3 }
 0x13a   :  { %3378 = vmatmul.mubr.msk.f32.gmra.mrb[52].mxu1 %vm74_vm1, %v637_v7 }
 0x13b   :  { %3380 = vmatprep.mubr.msk.f32.mxu1 %vm3747_vm0, %v3748_v3 }
 0x13e   :  { %3381 = vmatmul.mubr.msk.f32.gmra.mrb[54].mxu1 %vm74_vm1, %v3998_v54  ;;  %v932_v54 = vld [vmem:[%s4488_s7] sm:$0xf] }
 0x13f   :  { %3383 = vmatprep.mubr.msk.f32.mxu1 %vm3747_vm0, %v3748_v3  ;;  %3421 = vmatpush3.msk.msra.mxu0 %vm632_vm2, %v932_v54  ;;  %v3022_v54 = vld [vmem:[%s4491_s5] ss:$0 sm:$0xff] }
 0x140   :  { %3615 = vmatprep.subr.bf16.mxu0 %v3746_v0 }
 0x142   :  { %3384 = vmatmul.mubr.msk.f32.gmra.mrb[56].mxu1 %vm74_vm1, %v4004_v62  ;;  %v931_v62 = vld [vmem:[%s4489_s1] sm:$0x3] }
 0x143   :  { %3386 = vmatprep.mubr.msk.f32.mxu1 %vm3747_vm0, %v3748_v3  ;;  %3423 = vmatmul.mubr.msk.f32.vlgmr.msra.gmra.mrb[28].mxu0 %vm940_vm5, %v931_v62 }
 0x144   :  { %3429 = vmatprep.mubr.msk.f32.mxu0 %vm3747_vm0, %v3748_v3 }
 0x146   :  { %3387 = vmatmul.mubr.msk.f32.gmra.mrb[58].mxu1 %vm74_vm1, %v4010_v8  ;;  %v1017_v8 = vld [vmem:[%s4490_s6] sm:$0xff] }
 0x147   :  { %3389 = vmatprep.mubr.msk.f32.mxu1 %vm3747_vm0, %v3748_v3 }
 0x14a   :  { %3390 = vmatmul.mubr.msk.f32.gmra.mrb[60].mxu1 %vm74_vm1, %v4019_v17 }
 0x14b   :  { %3392 = vmatprep.mubr.msk.f32.mxu1 %vm3747_vm0, %v3748_v3 }
 0x14e   :  { %3393 = vmatmul.mubr.msk.f32.gmra.mrb[62].mxu1 %vm74_vm1, %v4014_v12  ;;  %v3616_v12 = vpack.c.bf16 %v1018_v9, %v1017_v8  ;;  %v3027_v9 = vld [vmem:[%s4490_s6 + $0x10] sm:$0xff] }
 0x14f   :  { %3399 = vmatprep.mubr.msk.f32.mxu1 %vm3747_vm0, %v3748_v3 }
 0x150   :  { %3617 = vmatpush3.bf16.msra.mxu0 %v3616_v12  ;;  %v3028_v12 = vld [vmem:[%s4490_s6 + $0x18] sm:$0xff] }
 0x151   :  { %3618 = vmatprep.subr.bf16.mxu0 %v3746_v0 }
 0x152   :  { %3400 = vmatmul.mubr.msk.f32.vlgmr.msra.gmra.mrb[64].mxu1 %vm74_vm1, %v4026_v25 }
 0x153   :  { %3402 = vmatprep.mubr.msk.f32.mxu1 %vm3747_vm0, %v3748_v3 }
 0x156   :  { %3403 = vmatmul.mubr.msk.f32.gmra.mrb[66].mxu1 %vm74_vm1, %v4038_v42 }
 0x157   :  { %3405 = vmatprep.mubr.msk.f32.mxu1 %vm3747_vm0, %v3748_v3 }
 0x15a   :  { %3406 = vmatmul.mubr.msk.f32.gmra.mrb[68].mxu1 %vm74_vm1, %v4046_v60 }
 0x15b   :  { %3408 = vmatprep.mubr.msk.f32.mxu1 %vm3747_vm0, %v3748_v3 }
 0x15e   :  { %3409 = vmatmul.mubr.msk.f32.gmra.mrb[70].mxu1 %vm74_vm1, %v4056_v15 }
 0x15f   :  { %3411 = vmatprep.mubr.msk.f32.mxu1 %vm3747_vm0, %v3748_v3 }
 0x162   :  { %3412 = vmatmul.mubr.msk.f32.gmra.mrb[72].mxu1 %vm74_vm1, %v4065_v31 }
 0x163   :  { %3414 = vmatprep.mubr.msk.f32.mxu1 %vm3747_vm0, %v3748_v3 }
 0x166   :  { %3415 = vmatmul.mubr.msk.f32.gmra.mrb[74].mxu1 %vm74_vm1, %v4076_v43 }
 0x167   :  { %3417 = vmatprep.mubr.msk.f32.mxu1 %vm3747_vm0, %v3748_v3 }
 0x16a   :  { %3418 = vmatmul.mubr.msk.f32.gmra.mrb[76].mxu1 %vm74_vm1, %v4071_v38 }
 0x1d1   :  { %v470_v17 = vpop.f32.mrb[22].mxu1 }
 0x1d2   :  { %v3326_v20 = vpop.f32.mrb[23].mxu1 }
 0x1d5   :  { %v475_v25 = vpop.f32.mrb[24].mxu1 }
 0x1d6   :  { %v3329_v27 = vpop.f32.mrb[25].mxu1 }
 0x1d9   :  { %v480_v42 = vpop.f32.mrb[26].mxu1 }
 0x1da   :  { %v3332_v60 = vpop.f32.mrb[27].mxu1 }
 0x1dd   :  { %v485_v15 = vpop.f32.mrb[28].mxu1 }
 0x1de   :  { %v3335_v22 = vpop.f32.mrb[29].mxu1 }
 0x1e1   :  { %v490_v23 = vpop.f32.mrb[30].mxu1 }
 0x1e2   :  { %v3338_v24 = vpop.f32.mrb[31].mxu1 }
 0x1e3   :  { %v3030_v24 = vld [vmem:[%s4490_s6 + $0x20] sm:$0xff] }
 0x1e5   :  { %v495_v26 = vpop.f32.mrb[32].mxu1 }
 0x1e6   :  { %v3341_v28 = vpop.f32.mrb[33].mxu1 }
 0x1e9   :  { %v500_v29 = vpop.f32.mrb[34].mxu1 }
 0x1ea   :  { %v3344_v30 = vpop.f32.mrb[35].mxu1 }
 0x1ed   :  { %v590_v31 = vpop.f32.mrb[36].mxu1 }
 0x1ee   :  { %v591_v32 = vadd.f32 %v590_v31, %v470_v17  ;;  %v3351_v35 = vpop.f32.mrb[37].mxu1 }
 0x1f1   :  { %v595_v36 = vpop.f32.mrb[38].mxu1 }
 0x1f2   :  { %v596_v37 = vadd.f32 %v595_v36, %v475_v25  ;;  %v3354_v38 = vpop.f32.mrb[39].mxu1  ;;  %v3619_v25 = vpack.c.bf16 %v3028_v12, %v3027_v9  ;;  %v3055_v9 = vld [vmem:[%s4490_s6 + $0xa8] sm:$0xff] }
 0x1f5   :  { %v600_v40 = vpop.f32.mrb[40].mxu1 }
 0x1f6   :  { %v601_v41 = vadd.f32 %v600_v40, %v480_v42  ;;  %v3357_v43 = vpop.f32.mrb[41].mxu1 }
 0x1f7   :  { %v3034_v43 = vld [vmem:[%s4490_s6 + $0x38] sm:$0xff] }
 0x1f9   :  { %v605_v44 = vpop.f32.mrb[42].mxu1 }
 0x1fa   :  { %v606_v45 = vadd.f32 %v605_v44, %v485_v15  ;;  %v3360_v47 = vpop.f32.mrb[43].mxu1 }
 0x1fd   :  { %v610_v48 = vpop.f32.mrb[44].mxu1 }
 0x1fe   :  { %v611_v50 = vadd.f32 %v610_v48, %v490_v23  ;;  %v3363_v51 = vpop.f32.mrb[45].mxu1 }
 0x201   :  { %v615_v52 = vpop.f32.mrb[46].mxu1 }
 0x202   :  { %v616_v53 = vadd.f32 %v615_v52, %v495_v26  ;;  %v3366_v56 = vpop.f32.mrb[47].mxu1  ;;  %v3031_v26 = vld [vmem:[%s4490_s6 + $0x28] sm:$0xff] }
 0x203   :  { %v3622_v30 = vpack.c.bf16 %v3031_v26, %v3030_v24  ;;  %v3063_v24 = vld [vmem:[%s4490_s6 + $0xd0] sm:$0xff]  ;;  %v3064_v26 = vld [vmem:[%s4490_s6 + $0xd8] sm:$0xff] }
 0x205   :  { %v620_v57 = vpop.f32.mrb[48].mxu1 }
 0x206   :  { %v621_v58 = vadd.f32 %v620_v57, %v500_v29  ;;  %v3369_v59 = vpop.f32.mrb[49].mxu1  ;;  %v3036_v57 = vld [vmem:[%s4490_s6 + $0x40] sm:$0xff] }
 0x209   :  { %v726_v61 = vpop.f32.mrb[50].mxu1 }
 0x20a   :  { %v760_v1 = vadd.f32 %v726_v61, %v591_v32  ;;  %v3376_v2 = vpop.f32.mrb[51].mxu1 }
 0x20d   :  { %v731_v4 = vpop.f32.mrb[52].mxu1 }
 0x20e   :  { %v761_v5 = vadd.f32 %v731_v4, %v596_v37  ;;  %v3379_v6 = vpop.f32.mrb[53].mxu1 }
 0x20f   :  { %v3040_v6 = vld [vmem:[%s4490_s6 + $0x58] sm:$0xff] }
 0x211   :  { %v736_v7 = vpop.f32.mrb[54].mxu1 }
 0x212   :  { %v762_v10 = vadd.f32 %v736_v7, %v601_v41  ;;  %v3382_v34 = vpop.f32.mrb[55].mxu1  ;;  %v3033_v41 = vld [vmem:[%s4490_s6 + $0x30] sm:$0xff] }
 0x213   :  { %v3625_v47 = vpack.c.bf16 %v3034_v43, %v3033_v41  ;;  %v3042_v34 = vld [vmem:[%s4490_s6 + $0x60] sm:$0xff]  ;;  %v3073_v43 = vld [vmem:[%s4490_s6 + $0x108] sm:$0xff] }
 0x214   :  { %v3072_v41 = vld [vmem:[%s4490_s6 + $0x100] sm:$0xff] }
 0x215   :  { %v741_v11 = vpop.f32.mrb[56].mxu1 }
 0x216   :  { %v763_v13 = vadd.f32 %v741_v11, %v606_v45  ;;  %v3385_v49 = vpop.f32.mrb[57].mxu1  ;;  %v3043_v11 = vld [vmem:[%s4490_s6 + $0x68] sm:$0xff] }
 0x219   :  { %v746_v14 = vpop.f32.mrb[58].mxu1 }
 0x21a   :  { %v764_v39 = vadd.f32 %v746_v14, %v611_v50  ;;  %v3388_v16 = vpop.f32.mrb[59].mxu1  ;;  %v3045_v14 = vld [vmem:[%s4490_s6 + $0x70] sm:$0xff] }
 0x21d   :  { %v751_v46 = vpop.f32.mrb[60].mxu1 }
 0x21e   :  { %v765_v18 = vadd.f32 %v751_v46, %v616_v53  ;;  %v3391_v19 = vpop.f32.mrb[61].mxu1 }
 0x21f   :  { %v3049_v19 = vld [vmem:[%s4490_s6 + $0x88] sm:$0xff] }
 0x221   :  { %v756_v55 = vpop.f32.mrb[62].mxu1 }
 0x222   :  { %v766_v63 = vadd.f32 %v756_v55, %v621_v58  ;;  %v3394_v21 = vpop.f32.mrb[63].mxu1  ;;  %v3037_v58 = vld [vmem:[%s4490_s6 + $0x48] sm:$0xff] }
 0x223   :  { %v3051_v21 = vld [vmem:[%s4490_s6 + $0x90] sm:$0xff] }
 0x225   :  { %v869_v33 = vpop.f32.mrb[64].mxu1 }
 0x226   :  { %v903_v62 = vadd.f32 %v869_v33, %v760_v1  ;;  %v3401_v8 = vpop.f32.mrb[65].mxu1  ;;  %v3628_v1 = vpack.c.bf16 %v3037_v58, %v3036_v57  ;;  %v3052_v33 = vld [vmem:[%s4490_s6 + $0x98] sm:$0xff]  ;;  %v3079_v57 = vld [vmem:[%s4490_s6 + $0x128] sm:$0xff] }
 0x227   :  { %v3054_v8 = vld [vmem:[%s4490_s6 + $0xa0] sm:$0xff] }
 0x228   :  { %v917_v17 = vadd.f32 %v3022_v54, %v903_v62  ;;  %v3646_v12 = vpack.c.bf16 %v3055_v9, %v3054_v8  ;;  %v3023_v8 = vld [vmem:[%s4493_s8] ss:$0 sm:$0xff] }
 0x229   :  { %v874_v20 = vpop.f32.mrb[66].mxu1 }
 0x22a   :  { %v924_v27 = vmax.f32 %v917_v17, 0.0  ;;  %v904_v42 = vadd.f32 %v874_v20, %v761_v5  ;;  %v3404_v60 = vpop.f32.mrb[67].mxu1  ;;  %v3039_v5 = vld [vmem:[%s4490_s6 + $0x50] sm:$0xff] }
 0x22b   :  { %v3631_v7 = vpack.c.bf16 %v3040_v6, %v3039_v5  ;;  %v3057_v20 = vld [vmem:[%s4490_s6 + $0xb0] sm:$0xff]  ;;  %v3060_v60 = vld [vmem:[%s4490_s6 + $0xc0] sm:$0xff]  ;;  %v3085_v6 = vld [vmem:[%s4490_s6 + $0x148] sm:$0xff] }
 0x22c   :  { %3430 = vmatmul.mubr.msk.f32.vlgmr.msra.gmra.mrb[28].mxu0 %vm74_vm1, %v924_v27  ;;  %v1096_v31 = vrot.slane %v924_v27, 2  ;;  %v1173_v48 = vrot.slane %v924_v27, 4  ;;  %v1250_v2 = vrot.slane %v924_v27, 6  ;;  %v918_v4 = vadd.f32 %v3022_v54, %v904_v42  ;;  %v3084_v5 = vld [vmem:[%s4490_s6 + $0x140] sm:$0xff] }
 0x22d   :  { %3620 = vmatpush3.bf16.msra.mxu0 %v3619_v25  ;;  %v879_v15 = vpop.f32.mrb[68].mxu1  ;;  %3436 = vmatprep.mubr.msk.f32.mxu0 %vm3747_vm0, %v3748_v3  ;;  %v3058_v25 = vld [vmem:[%s4490_s6 + $0xb8] sm:$0xff] }
 0x22e   :  { %v905_v22 = vadd.f32 %v879_v15, %v762_v10  ;;  %v3407_v23 = vpop.f32.mrb[69].mxu1  ;;  %3621 = vmatprep.subr.bf16.mxu0 %v3746_v0  ;;  %v925_v10 = vmax.f32 %v918_v4, 0.0  ;;  %v3649_v27 = vpack.c.bf16 %v3058_v25, %v3057_v20  ;;  %v3061_v15 = vld [vmem:[%s4490_s6 + $0xc8] sm:$0xff] }
 0x230   :  { %v4233_v28 = vadd.f32 %v3022_v54, %v905_v22  ;;  %v1404_v49 = vrot.slane %v925_v10, 2  ;;  %v1481_v46 = vrot.slane %v925_v10, 4  ;;  %v3652_v22 = vpack.c.bf16 %v3061_v15, %v3060_v60 }
 0x231   :  { %v884_v29 = vpop.f32.mrb[70].mxu1 }
 0x232   :  { %v906_v32 = vadd.f32 %v884_v29, %v763_v13  ;;  %v3410_v35 = vpop.f32.mrb[71].mxu1  ;;  %v3634_v13 = vpack.c.bf16 %v3043_v11, %v3042_v34  ;;  %v926_v62 = vmax.f32 %v4233_v28, 0.0  ;;  %v3655_v28 = vpack.c.bf16 %v3064_v26, %v3063_v24  ;;  %v3087_v34 = vld [vmem:[%s4490_s6 + $0x150] sm:$0xff]  ;;  %v3088_v11 = vld [vmem:[%s4490_s6 + $0x158] sm:$0xff] }
 0x234   :  { %v4235_v36 = vadd.f32 %v3022_v54, %v906_v32  ;;  %3437 = vmatmul.mubr.msk.f32.vlgmr.msra.gmra.mrb[28].mxu0 %vm74_vm1, %v1096_v31  ;;  %v1712_v17 = vrot.slane %v926_v62, 2  ;;  %v1789_v42 = vrot.slane %v926_v62, 4  ;;  %v1866_v23 = vrot.slane %v926_v62, 6  ;;  %v3067_v31 = vld [vmem:[%s4490_s6 + $0xe8] sm:$0xff] }
 0x235   :  { %3623 = vmatpush3.bf16.msra.mxu0 %v3622_v30  ;;  %v889_v37 = vpop.f32.mrb[72].mxu1  ;;  %3443 = vmatprep.mubr.msk.f32.mxu0 %vm3747_vm0, %v3748_v3  ;;  %v3066_v30 = vld [vmem:[%s4490_s6 + $0xe0] sm:$0xff] }
 0x236   :  { %v907_v38 = vadd.f32 %v889_v37, %v764_v39  ;;  %v3413_v40 = vpop.f32.mrb[73].mxu1  ;;  %3624 = vmatprep.subr.bf16.mxu0 %v3746_v0  ;;  %v3046_v39 = vld [vmem:[%s4490_s6 + $0x78] sm:$0xff]  ;;  %v927_v29 = vmax.f32 %v4235_v36, 0.0  ;;  %v3658_v32 = vpack.c.bf16 %v3067_v31, %v3066_v30  ;;  %v3069_v36 = vld [vmem:[%s4490_s6 + $0xf0] sm:$0xff] }
 0x237   :  { %v3637_v16 = vpack.c.bf16 %v3046_v39, %v3045_v14  ;;  %v3070_v37 = vld [vmem:[%s4490_s6 + $0xf8] sm:$0xff]  ;;  %v3090_v14 = vld [vmem:[%s4490_s6 + $0x160] sm:$0xff]  ;;  %v3091_v39 = vld [vmem:[%s4490_s6 + $0x168] sm:$0xff] }
 0x238   :  { %v4247_v44 = vadd.f32 %v3022_v54, %v907_v38  ;;  %v2020_v35 = vrot.slane %v927_v29, 2  ;;  %v3661_v38 = vpack.c.bf16 %v3070_v37, %v3069_v36  ;;  %v2097_v40 = vrot.slane %v927_v29, 4 }
 0x239   :  { %v894_v45 = vpop.f32.mrb[74].mxu1 }
 0x23a   :  { %v908_v50 = vadd.f32 %v894_v45, %v765_v18  ;;  %v3416_v51 = vpop.f32.mrb[75].mxu1  ;;  %v3048_v18 = vld [vmem:[%s4490_s6 + $0x80] sm:$0xff]  ;;  %v3664_v45 = vpack.c.bf16 %v3073_v43, %v3072_v41 }
 0x23b   :  { %v3640_v55 = vpack.c.bf16 %v3049_v19, %v3048_v18  ;;  %v3094_v18 = vld [vmem:[%s4490_s6 + $0x178] sm:$0xff] }
 0x23c   :  { %v4249_v52 = vadd.f32 %v3022_v54, %v908_v50  ;;  %3444 = vmatmul.mubr.msk.f32.vlgmr.msra.gmra.mrb[28].mxu0 %vm74_vm1, %v1173_v48  ;;  %v3075_v48 = vld [vmem:[%s4490_s6 + $0x110] sm:$0xff]  ;;  %v3076_v50 = vld [vmem:[%s4490_s6 + $0x118] sm:$0xff] }
 0x23d   :  { %3626 = vmatpush3.bf16.msra.mxu0 %v3625_v47  ;;  %v899_v53 = vpop.f32.mrb[76].mxu1  ;;  %3450 = vmatprep.mubr.msk.f32.mxu0 %vm3747_vm0, %v3748_v3  ;;  %v2174_v47 = vrot.slane %v927_v29, 6  ;;  %v3667_v51 = vpack.c.bf16 %v3076_v50, %v3075_v48 }
 0x23e   :  { %v909_v56 = vadd.f32 %v899_v53, %v766_v63  ;;  %3627 = vmatprep.subr.bf16.mxu0 %v3746_v0  ;;  %v3419_v59 = vpop.f32.mrb[77].mxu1  ;;  %v1558_v63 = vrot.slane %v925_v10, 6  ;;  %v928_v53 = vmax.f32 %v4247_v44, 0.0  ;;  %v3081_v44 = vld [vmem:[%s4490_s6 + $0x130] sm:$0xff] }
 0x240   :  { %v4261_v61 = vadd.f32 %v3022_v54, %v909_v56  ;;  %v3643_v54 = vpack.c.bf16 %v3052_v33, %v3051_v21  ;;  %v3078_v56 = vld [vmem:[%s4490_s6 + $0x120] sm:$0xff]  ;;  %v2328_v59 = vrot.slane %v928_v53, 2  ;;  %v2405_v4 = vrot.slane %v928_v53, 4  ;;  %v3097_v21 = vld [vmem:[%s4490_s6 + $0x188] sm:$0xff] }
 0x241   :  { %v3670_v58 = vpack.c.bf16 %v3079_v57, %v3078_v56 }
 0x244   :  { %3451 = vmatmul.mubr.msk.f32.vlgmr.msra.gmra.mrb[28].mxu0 %vm74_vm1, %v1250_v2 }
 0x245   :  { %3629 = vmatpush3.bf16.msra.mxu0 %v3628_v1  ;;  %3457 = vmatprep.mubr.msk.f32.mxu0 %vm3747_vm0, %v3748_v3  ;;  %v3082_v1 = vld [vmem:[%s4490_s6 + $0x138] sm:$0xff] }
 0x246   :  { %3630 = vmatprep.subr.bf16.mxu0 %v3746_v0  ;;  %v3673_v2 = vpack.c.bf16 %v3082_v1, %v3081_v44 }
 0x24c   :  { %3458 = vmatmul.mubr.msk.f32.vlgmr.msra.gmra.mrb[28].mxu0 %vm74_vm1, %v925_v10  ;;  %v2482_v10 = vrot.slane %v928_v53, 6 }
 0x24d   :  { %3632 = vmatpush3.bf16.msra.mxu0 %v3631_v7  ;;  %3464 = vmatprep.mubr.msk.f32.mxu0 %vm3747_vm0, %v3748_v3  ;;  %v3676_v7 = vpack.c.bf16 %v3085_v6, %v3084_v5 }
 0x24e   :  { %3633 = vmatprep.subr.bf16.mxu0 %v3746_v0 }
 0x254   :  { %3465 = vmatmul.mubr.msk.f32.vlgmr.msra.gmra.mrb[28].mxu0 %vm74_vm1, %v1404_v49  ;;  %v929_v49 = vmax.f32 %v4249_v52, 0.0  ;;  %v3093_v52 = vld [vmem:[%s4490_s6 + $0x170] sm:$0xff] }
 0x255   :  { %3635 = vmatpush3.bf16.msra.mxu0 %v3634_v13  ;;  %3471 = vmatprep.mubr.msk.f32.mxu0 %vm3747_vm0, %v3748_v3  ;;  %v3679_v13 = vpack.c.bf16 %v3088_v11, %v3087_v34  ;;  %v3685_v19 = vpack.c.bf16 %v3094_v18, %v3093_v52 }
 0x256   :  { %3636 = vmatprep.subr.bf16.mxu0 %v3746_v0 }
 0x25c   :  { %3472 = vmatmul.mubr.msk.f32.vlgmr.msra.gmra.mrb[28].mxu0 %vm74_vm1, %v1481_v46  ;;  %v2636_v46 = vrot.slane %v929_v49, 2 }
 0x25d   :  { %3638 = vmatpush3.bf16.msra.mxu0 %v3637_v16  ;;  %3478 = vmatprep.mubr.msk.f32.mxu0 %vm3747_vm0, %v3748_v3  ;;  %v3682_v16 = vpack.c.bf16 %v3091_v39, %v3090_v14 }
 0x25e   :  { %3639 = vmatprep.subr.bf16.mxu0 %v3746_v0 }
 0x264   :  { %3479 = vmatmul.mubr.msk.f32.vlgmr.msra.gmra.mrb[28].mxu0 %vm74_vm1, %v1558_v63  ;;  %v3096_v63 = vld [vmem:[%s4490_s6 + $0x180] sm:$0xff] }
 0x265   :  { %3641 = vmatpush3.bf16.msra.mxu0 %v3640_v55  ;;  %3485 = vmatprep.mubr.msk.f32.mxu0 %vm3747_vm0, %v3748_v3  ;;  %v2713_v55 = vrot.slane %v929_v49, 4  ;;  %v3688_v33 = vpack.c.bf16 %v3097_v21, %v3096_v63 }
 0x266   :  { %3642 = vmatprep.subr.bf16.mxu0 %v3746_v0 }
 0x26c   :  { %3486 = vmatmul.mubr.msk.f32.vlgmr.msra.gmra.mrb[28].mxu0 %vm74_vm1, %v926_v62  ;;  %v930_v62 = vmax.f32 %v4261_v61, 0.0 }
 0x26d   :  { %3644 = vmatpush3.bf16.msra.mxu0 %v3643_v54  ;;  %3492 = vmatprep.mubr.msk.f32.mxu0 %vm3747_vm0, %v3748_v3  ;;  %v2790_v54 = vrot.slane %v929_v49, 6 }
 0x26e   :  { %3645 = vmatprep.subr.bf16.mxu0 %v3746_v0 }
 0x274   :  { %3493 = vmatmul.mubr.msk.f32.vlgmr.msra.gmra.mrb[28].mxu0 %vm74_vm1, %v1712_v17 }
 0x275   :  { %3647 = vmatpush3.bf16.msra.mxu0 %v3646_v12  ;;  %3499 = vmatprep.mubr.msk.f32.mxu0 %vm3747_vm0, %v3748_v3 }
 0x276   :  { %3648 = vmatprep.subr.bf16.mxu0 %v3746_v0 }
 0x27c   :  { %3500 = vmatmul.mubr.msk.f32.vlgmr.msra.gmra.mrb[28].mxu0 %vm74_vm1, %v1789_v42 }
 0x27d   :  { %3650 = vmatpush3.bf16.msra.mxu0 %v3649_v27  ;;  %3506 = vmatprep.mubr.msk.f32.mxu0 %vm3747_vm0, %v3748_v3 }
 0x27e   :  { %3651 = vmatprep.subr.bf16.mxu0 %v3746_v0 }
 0x284   :  { %3507 = vmatmul.mubr.msk.f32.vlgmr.msra.gmra.mrb[28].mxu0 %vm74_vm1, %v1866_v23 }
 0x285   :  { %3653 = vmatpush3.bf16.msra.mxu0 %v3652_v22  ;;  %3513 = vmatprep.mubr.msk.f32.mxu0 %vm3747_vm0, %v3748_v3 }
 0x286   :  { %3654 = vmatprep.subr.bf16.mxu0 %v3746_v0 }
 0x28c   :  { %3514 = vmatmul.mubr.msk.f32.vlgmr.msra.gmra.mrb[28].mxu0 %vm74_vm1, %v927_v29 }
 0x28d   :  { %3656 = vmatpush3.bf16.msra.mxu0 %v3655_v28  ;;  %3520 = vmatprep.mubr.msk.f32.mxu0 %vm3747_vm0, %v3748_v3 }
 0x28e   :  { %3657 = vmatprep.subr.bf16.mxu0 %v3746_v0 }
 0x294   :  { %3521 = vmatmul.mubr.msk.f32.vlgmr.msra.gmra.mrb[28].mxu0 %vm74_vm1, %v2020_v35 }
 0x295   :  { %3659 = vmatpush3.bf16.msra.mxu0 %v3658_v32  ;;  %3527 = vmatprep.mubr.msk.f32.mxu0 %vm3747_vm0, %v3748_v3 }
 0x296   :  { %3660 = vmatprep.subr.bf16.mxu0 %v3746_v0 }
 0x29c   :  { %3528 = vmatmul.mubr.msk.f32.vlgmr.msra.gmra.mrb[28].mxu0 %vm74_vm1, %v2097_v40 }
 0x29d   :  { %3662 = vmatpush3.bf16.msra.mxu0 %v3661_v38  ;;  %3534 = vmatprep.mubr.msk.f32.mxu0 %vm3747_vm0, %v3748_v3 }
 0x29e   :  { %3663 = vmatprep.subr.bf16.mxu0 %v3746_v0 }
 0x2a4   :  { %3535 = vmatmul.mubr.msk.f32.vlgmr.msra.gmra.mrb[28].mxu0 %vm74_vm1, %v2174_v47 }
 0x2a5   :  { %3665 = vmatpush3.bf16.msra.mxu0 %v3664_v45  ;;  %3541 = vmatprep.mubr.msk.f32.mxu0 %vm3747_vm0, %v3748_v3 }
 0x2a6   :  { %3666 = vmatprep.subr.bf16.mxu0 %v3746_v0 }
 0x2ac   :  { %3542 = vmatmul.mubr.msk.f32.vlgmr.msra.gmra.mrb[28].mxu0 %vm74_vm1, %v928_v53 }
 0x2ad   :  { %3668 = vmatpush3.bf16.msra.mxu0 %v3667_v51  ;;  %3548 = vmatprep.mubr.msk.f32.mxu0 %vm3747_vm0, %v3748_v3 }
 0x2ae   :  { %3669 = vmatprep.subr.bf16.mxu0 %v3746_v0 }
 0x2b4   :  { %3549 = vmatmul.mubr.msk.f32.vlgmr.msra.gmra.mrb[28].mxu0 %vm74_vm1, %v2328_v59 }
 0x2b5   :  { %3671 = vmatpush3.bf16.msra.mxu0 %v3670_v58  ;;  %3555 = vmatprep.mubr.msk.f32.mxu0 %vm3747_vm0, %v3748_v3 }
 0x2b6   :  { %3672 = vmatprep.subr.bf16.mxu0 %v3746_v0 }
 0x2bc   :  { %3556 = vmatmul.mubr.msk.f32.vlgmr.msra.gmra.mrb[28].mxu0 %vm74_vm1, %v2405_v4 }
 0x2bd   :  { %3674 = vmatpush3.bf16.msra.mxu0 %v3673_v2  ;;  %3562 = vmatprep.mubr.msk.f32.mxu0 %vm3747_vm0, %v3748_v3 }
 0x2be   :  { %3675 = vmatprep.subr.bf16.mxu0 %v3746_v0 }
 0x2c4   :  { %3563 = vmatmul.mubr.msk.f32.vlgmr.msra.gmra.mrb[28].mxu0 %vm74_vm1, %v2482_v10 }
 0x2c5   :  { %3677 = vmatpush3.bf16.msra.mxu0 %v3676_v7  ;;  %3569 = vmatprep.mubr.msk.f32.mxu0 %vm3747_vm0, %v3748_v3 }
 0x2c6   :  { %3678 = vmatprep.subr.bf16.mxu0 %v3746_v0 }
 0x2cc   :  { %3570 = vmatmul.mubr.msk.f32.vlgmr.msra.gmra.mrb[28].mxu0 %vm74_vm1, %v929_v49 }
 0x2cd   :  { %3680 = vmatpush3.bf16.msra.mxu0 %v3679_v13  ;;  %3576 = vmatprep.mubr.msk.f32.mxu0 %vm3747_vm0, %v3748_v3 }
 0x2ce   :  { %3681 = vmatprep.subr.bf16.mxu0 %v3746_v0 }
 0x2d4   :  { %3577 = vmatmul.mubr.msk.f32.vlgmr.msra.gmra.mrb[28].mxu0 %vm74_vm1, %v2636_v46 }
 0x2d5   :  { %3683 = vmatpush3.bf16.msra.mxu0 %v3682_v16  ;;  %3583 = vmatprep.mubr.msk.f32.mxu0 %vm3747_vm0, %v3748_v3 }
 0x2d6   :  { %3684 = vmatprep.subr.bf16.mxu0 %v3746_v0 }
 0x2dc   :  { %3584 = vmatmul.mubr.msk.f32.vlgmr.msra.gmra.mrb[28].mxu0 %vm74_vm1, %v2713_v55 }
 0x2dd   :  { %3686 = vmatpush3.bf16.msra.mxu0 %v3685_v19  ;;  %3590 = vmatprep.mubr.msk.f32.mxu0 %vm3747_vm0, %v3748_v3 }
 0x2de   :  { %3687 = vmatprep.subr.bf16.mxu0 %v3746_v0  ;;  %v16_v0 = vstv %s4492_s10 }
 0x2df   :  { %17 = vst [vmem:[#allocation2] sm:$0x1] %v16_v0 }
 0x2e4   :  { %3591 = vmatmul.mubr.msk.f32.vlgmr.msra.gmra.mrb[28].mxu0 %vm74_vm1, %v2790_v54 }
 0x2e5   :  { %3689 = vmatpush3.bf16.msra.mxu0 %v3688_v33  ;;  %3597 = vmatprep.mubr.msk.f32.mxu0 %vm3747_vm0, %v3748_v3  ;;  %v3099_v3 = vld [vmem:[%s4494_s9] ss:$0 sm:$0xff] }
 0x2e6   :  { %v3100_v27 = vld [vmem:[#allocation2] ss:$0 sm:$0xff] }
 0x2ec   :  { %3598 = vmatmul.mubr.msk.f32.vlgmr.msra.gmra.mrb[28].mxu0 %vm74_vm1, %v930_v62 }
 0x3bf   :  { %v2936_v9 = vpop.f32.mrb[28].mxu0 }
 0x3c0   :  { %v3692_v12 = vadd.f32 %v3023_v8, %v2936_v9  ;;  %v3599_v17 = vpop.f32.mrb[29].mxu0 }
 0x3c2   :  { %v2941_v20 = vmax.f32 %v3692_v12, 0.0 }
 0x3c4   :  { %v2949_v61 = vmul.f32 %v3099_v3, %v2941_v20 }
 0x3c6   :  { %v2951_v25 = vsel %vm2950_vm6, %v2949_v61, 0.0 }
 0x3c7   :  { %2952 = vadd.xlane.f32.xlu0 %v2951_v25 }
 0x454   :  { %v2953_v42 = vpop.xlane.xlu0 %2952 }
 0x455   :  { %v2961_v60 = vadd.f32 %v3100_v27, %v2953_v42 }
 0x457   :  { %2963 = vst.msk [vmem:[%s4495_s11] sm:$0x3] %vm2962_vm7, %v2961_v60 }

</bundles_post_ra>
